<compile_context>
chip_gen: v7x
topology: tpu7x:2x2x1
jax: 0.10.0
libtpu: 0.0.40
codegen_flags: <defaults>
</compile_context>

<pallas_src>
import math

import jax
import jax.numpy as jnp
from jax.experimental import pallas as pl
from jax.experimental.pallas import tpu as pltpu

HIDDEN = 32
FF = 64
NUM_HEADS = 4
NUM_LAYERS = 2
HEAD_SIZE = HIDDEN // NUM_HEADS
EPS = 1e-6
NEG_BIG = -1e30   # finite "masked" bias (no NaN even for fully-masked rows)


# ----------------------------------------------------------------------------
# Kernel helpers
# ----------------------------------------------------------------------------
def _layer_norm(x, g, b):
    mu = jnp.mean(x, axis=-1, keepdims=True)
    var = jnp.mean((x - mu) ** 2, axis=-1, keepdims=True)
    return (x - mu) * jax.lax.rsqrt(var + EPS) * g + b


def _layer_norm_ref(x, g, b):
    # Reference-side LN (plain divide; numerically equivalent to within fp error).
    mu = jnp.mean(x, axis=-1, keepdims=True)
    var = jnp.mean((x - mu) ** 2, axis=-1, keepdims=True)
    return (x - mu) / jnp.sqrt(var + EPS) * g + b


# ----------------------------------------------------------------------------
# Fused kernel: all encoder layers + final LayerNorm for one batch tile.
# ----------------------------------------------------------------------------
def fused_encoder_kernel(x_ref, bias_ref,
                         wqkv_ref, bqkv_ref, wo_ref, bo_ref,
                         w1_ref, b1_ref, w2_ref, b2_ref,
                         ln_g_ref, ln_b_ref,
                         out_ref):
    TB, S, H = x_ref.shape
    M = TB * S
    x = x_ref[...].reshape(M, H)          # fold batch tile into rows

    ln_g = ln_g_ref[...]                  # (2*NUM_LAYERS + 1, H)
    ln_b = ln_b_ref[...]
    bias = bias_ref[...]                  # (TB, 1, S) additive key mask (0 / -1e30)

    for l in range(NUM_LAYERS):           # static unroll (NUM_LAYERS is tiny)
        g1 = ln_g[2 * l:2 * l + 1, :]
        be1 = ln_b[2 * l:2 * l + 1, :]
        g2 = ln_g[2 * l + 1:2 * l + 2, :]
        be2 = ln_b[2 * l + 1:2 * l + 2, :]

        # --- pre-LN + fused QKV projection over the whole (TB*S, H) slab ---
        # (1/sqrt(head_size) already folded into the Wq/bq columns at pack time)
        xn = _layer_norm(x, g1, be1)
        qkv = jnp.dot(xn, wqkv_ref[l], preferred_element_type=jnp.float32) + bqkv_ref[l]

        # --- attention: static loop over heads, batched over the batch tile ---
        ctx_heads = []
        for h in range(NUM_HEADS):
            c0 = h * HEAD_SIZE
            qh = qkv[:, c0:c0 + HEAD_SIZE].reshape(TB, S, HEAD_SIZE)
            kh = qkv[:, H + c0:H + c0 + HEAD_SIZE].reshape(TB, S, HEAD_SIZE)
            vh = qkv[:, 2 * H + c0:2 * H + c0 + HEAD_SIZE].reshape(TB, S, HEAD_SIZE)
            s = jnp.einsum('bqd,bkd->bqk', qh, kh,
                           preferred_element_type=jnp.float32) + bias
            s = s - jnp.max(s, axis=-1, keepdims=True)
            e = jnp.exp(s)
            inv = pl.reciprocal(jnp.sum(e, axis=-1, keepdims=True), approx=True)
            att = e * inv
            ctx_heads.append(jnp.einsum('bqk,bkd->bqd', att, vh,
                                        preferred_element_type=jnp.float32))
        ctx = jnp.concatenate(ctx_heads, axis=-1).reshape(M, H)

        # --- single output projection over the full (M, H) context + residual ---
        attn = jnp.dot(ctx, wo_ref[l],
                       preferred_element_type=jnp.float32) + bo_ref[l]
        h1 = attn + x                                # dropout = identity (eval)

        # --- position-wise feed-forward (own pre-LN + residual) ---
        hn = _layer_norm(h1, g2, be2)
        f = jnp.maximum(
            jnp.dot(hn, w1_ref[l], preferred_element_type=jnp.float32) + b1_ref[l], 0.0)
        x = jnp.dot(f, w2_ref[l], preferred_element_type=jnp.float32) + b2_ref[l] + h1

    # --- final LayerNorm ---
    gF = ln_g[2 * NUM_LAYERS:2 * NUM_LAYERS + 1, :]
    bF = ln_b[2 * NUM_LAYERS:2 * NUM_LAYERS + 1, :]
    out_ref[...] = _layer_norm(x, gF, bF).reshape(TB, S, H)


# ----------------------------------------------------------------------------
# Wrapper
# ----------------------------------------------------------------------------
def positional_encoding(S, H):
    position = jnp.arange(S, dtype=jnp.float32)[:, None]
    div_term = jnp.exp(jnp.arange(0, H, 2, dtype=jnp.float32) * -(math.log(10000.0) / H))
    pe = jnp.zeros((S, H), dtype=jnp.float32)
    pe = pe.at[:, 0::2].set(jnp.sin(position * div_term))
    pe = pe.at[:, 1::2].set(jnp.cos(position * div_term))
    return pe


def _choose_batch_tile(B, S):
    # Single program (batch_tile = B) unless the per-tile work is large enough
    # to justify sharding across v7x's two TensorCores: each tile should carry
    # >= ~256 rows to amortize the fixed per-grid-step cost and MXU fill/drain.
    # On 1-TC chips (v5e/v6e) a single program is always at least as good.
    if B % 2 == 0 and (B // 2) * S >= 256:
        return B // 2
    return B


def transformer_encoder_forward(embed_src, mask_bool, packed_params, batch_tile=None):
    """Full TransformerEncoder.forward (non-fusion path, eval mode)."""
    B, S, H = embed_src.shape
    x = embed_src + positional_encoding(S, H)[None]          # PositionalEncoding
    # emb_dropout: identity at inference.
    mask_bias = jnp.where(mask_bool, 0.0, NEG_BIG).astype(jnp.float32)   # (B, 1, S)

    if batch_tile is None:
        batch_tile = _choose_batch_tile(B, S)
    assert B % batch_tile == 0
    n_tiles = B // batch_tile

    def _w_spec(arr):
        nd = arr.ndim
        return pl.BlockSpec(arr.shape, lambda i, _nd=nd: (0,) * _nd)

    in_specs = [
        pl.BlockSpec((batch_tile, S, H), lambda i: (i, 0, 0)),   # x
        pl.BlockSpec((batch_tile, 1, S), lambda i: (i, 0, 0)),   # additive mask bias
    ] + [_w_spec(w) for w in packed_params]

    # TODO(synk): if S/H/FF/NUM_LAYERS scale up, re-derive the live-value VMEM
    # footprint against v7x's 64 MiB (set vmem_limit_bytes) and move the layer
    # loop onto a grid axis / fori_loop to bound live ranges.
    out = pl.pallas_call(
        fused_encoder_kernel,
        out_shape=jax.ShapeDtypeStruct((B, S, H), jnp.float32),
        grid=(n_tiles,),
        in_specs=in_specs,
        out_specs=pl.BlockSpec((batch_tile, S, H), lambda i: (i, 0, 0)),
        compiler_params=pltpu.CompilerParams(dimension_semantics=("parallel",)),
    )(x, mask_bias, *packed_params)
    return out, None                                   # (output, hidden_concat=None)


# ----------------------------------------------------------------------------
# Deterministic parameter init (synthetic weights, PyTorch shapes transposed)
# ----------------------------------------------------------------------------
def init_params(key):
    layer_params = []
    for layer in range(NUM_LAYERS):
        kl = jax.random.fold_in(key, layer)
        ks = jax.random.split(kl, 16)

        def w(k, shape, scale=0.05):
            return jax.random.normal(k, shape, dtype=jnp.float32) * scale

        p = (
            1.0 + 0.02 * jax.random.normal(ks[0], (1, HIDDEN), dtype=jnp.float32),  # ln1 gamma
            0.02 * jax.random.normal(ks[1], (1, HIDDEN), dtype=jnp.float32),        # ln1 beta
            w(ks[2], (HIDDEN, HIDDEN)), w(ks[3], (1, HIDDEN)),                      # Wq, bq
            w(ks[4], (HIDDEN, HIDDEN)), w(ks[5], (1, HIDDEN)),                      # Wk, bk
            w(ks[6], (HIDDEN, HIDDEN)), w(ks[7], (1, HIDDEN)),                      # Wv, bv
            w(ks[8], (HIDDEN, HIDDEN)), w(ks[9], (1, HIDDEN)),                      # Wo, bo
            1.0 + 0.02 * jax.random.normal(ks[10], (1, HIDDEN), dtype=jnp.float32), # ln2 gamma
            0.02 * jax.random.normal(ks[11], (1, HIDDEN), dtype=jnp.float32),       # ln2 beta
            w(ks[12], (HIDDEN, FF)), w(ks[13], (1, FF)),                            # W1, b1
            w(ks[14], (FF, HIDDEN)), w(ks[15], (1, HIDDEN)),                        # W2, b2
        )
        layer_params.append(p)

    kf = jax.random.fold_in(key, 10_000)
    kg, kb = jax.random.split(kf)
    final_ln = (
        1.0 + 0.02 * jax.random.normal(kg, (1, HIDDEN), dtype=jnp.float32),
        0.02 * jax.random.normal(kb, (1, HIDDEN), dtype=jnp.float32),
    )
    return layer_params, final_ln


def pack_params(layer_params, final_ln_params):
    """Pack per-layer params into a few stacked arrays for the fused kernel.

    The attention scale 1/sqrt(head_size) is folded into Wq/bq here (one-time,
    pack-time), so the kernel never multiplies q by the scale.
    """
    scale = 1.0 / math.sqrt(HEAD_SIZE)
    wqkv, bqkv, wo, bo, w1, b1, w2, b2 = [], [], [], [], [], [], [], []
    ln_g, ln_b = [], []
    for p in layer_params:
        (g1, be1, wq, bq, wk, bk, wv, bv, wo_, bo_,
         g2, be2, w1_, b1_, w2_, b2_) = p
        wqkv.append(jnp.concatenate([wq * scale, wk, wv], axis=1))     # (H, 3H)
        bqkv.append(jnp.concatenate([bq * scale, bk, bv], axis=1))     # (1, 3H)
        wo.append(wo_); bo.append(bo_)
        w1.append(w1_); b1.append(b1_)
        w2.append(w2_); b2.append(b2_)
        ln_g.extend([g1, g2]); ln_b.extend([be1, be2])
    gF, bF = final_ln_params
    ln_g.append(gF); ln_b.append(bF)
    return (
        jnp.stack(wqkv),             # (L, H, 3H)
        jnp.stack(bqkv),             # (L, 1, 3H)
        jnp.stack(wo),               # (L, H, H)
        jnp.stack(bo),               # (L, 1, H)
        jnp.stack(w1),               # (L, H, FF)
        jnp.stack(b1),               # (L, 1, FF)
        jnp.stack(w2),               # (L, FF, H)
        jnp.stack(b2),               # (L, 1, H)
        jnp.concatenate(ln_g, 0),    # (2L+1, H)  [ln1_0, ln2_0, ln1_1, ln2_1, final]
        jnp.concatenate(ln_b, 0),    # (2L+1, H)
    )


# ----------------------------------------------------------------------------
# Pure-JAX reference (mirrors the PyTorch forward exactly) for validation
# ----------------------------------------------------------------------------
def reference_forward(embed_src, mask_bool, layer_params, final_ln_params):
    B, S, H = embed_src.shape
    x = embed_src + positional_encoding(S, H)[None]
    for p in layer_params:
        (ln1_g, ln1_b, wq, bq, wk, bk, wv, bv, wo, bo,
         ln2_g, ln2_b, w1, b1, w2, b2) = p
        xn = _layer_norm_ref(x, ln1_g, ln1_b)
        q = xn @ wq + bq
        k = xn @ wk + bk
        v = xn @ wv + bv

        def split(t):
            return t.reshape(B, S, NUM_HEADS, HEAD_SIZE).transpose(0, 2, 1, 3)

        qh = split(q) / math.sqrt(HEAD_SIZE)
        kh, vh = split(k), split(v)
        scores = jnp.einsum("bhqd,bhkd->bhqk", qh, kh)
        scores = jnp.where(mask_bool[:, None, :, :], scores, -jnp.inf)
        att = jax.nn.softmax(scores, axis=-1)
        ctx = jnp.einsum("bhqk,bhkd->bhqd", att, vh).transpose(0, 2, 1, 3).reshape(B, S, H)
        h1 = ctx @ wo + bo + x
        hn = _layer_norm_ref(h1, ln2_g, ln2_b)
        x = jnp.maximum(hn @ w1 + b1, 0.0) @ w2 + b2 + h1
    return _layer_norm_ref(x, *final_ln_params)


# ----------------------------------------------------------------------------
if __name__ == "__main__":
    B, S = 2, 8
    key = jax.random.PRNGKey(0)
    k_emb, k_par = jax.random.split(key)

    embed_src = jax.random.normal(k_emb, (B, S, HIDDEN), dtype=jnp.float32)
    lengths = jnp.array([S, S - 3])
    mask_bool = (jnp.arange(S)[None, :] < lengths[:, None])[:, None, :]   # (B, 1, S)

    layer_params, final_ln_params = init_params(k_par)
    packed = pack_params(layer_params, final_ln_params)

    out, hidden_concat = transformer_encoder_forward(embed_src, mask_bool, packed)
    out = jax.block_until_ready(out)
    assert hidden_concat is None

    ref = reference_forward(embed_src, mask_bool, layer_params, final_ln_params)
    max_err = float(jnp.max(jnp.abs(out - ref)))
    # Tolerance loosened slightly vs. a pure-f32 kernel: the softmax denominator
    # uses the EUP approximate reciprocal (pl.reciprocal(approx=True)).
    assert jnp.allclose(out, ref, atol=5e-3, rtol=5e-3), f"max abs err {max_err}"

    # Note: fully-masked rows would produce a uniform attention distribution here
    # (finite -1e30 bias) instead of the reference's NaN (-inf mask); not exercised.
    # TODO(synk): fusion path (SpatialEmbeddings projections + TimeAlignmentModule)
    # is not exercised since use_fusion defaults to False and those classes are
    # not part of the provided module source.
    # TODO(synk): optional bf16 weight/activation cast (v6e/v7x) only worthwhile if
    # HIDDEN/FF grow well beyond 32/64; flip dtypes in pack_params at that point.
    print("KERNEL_OK")
</pallas_src>

<mosaic_0001>
module attributes {stable_mosaic.version = 11 : i64} {
  func.func @fused_encoder_kernel(%arg0: i32, %arg1: memref<2x8x32xf32, #tpu.memory_space<vmem>>, %arg2: memref<2x1x8xf32, #tpu.memory_space<vmem>>, %arg3: memref<2x32x96xf32, #tpu.memory_space<vmem>>, %arg4: memref<2x1x96xf32, #tpu.memory_space<vmem>>, %arg5: memref<2x32x32xf32, #tpu.memory_space<vmem>>, %arg6: memref<2x1x32xf32, #tpu.memory_space<vmem>>, %arg7: memref<2x32x64xf32, #tpu.memory_space<vmem>>, %arg8: memref<2x1x64xf32, #tpu.memory_space<vmem>>, %arg9: memref<2x64x32xf32, #tpu.memory_space<vmem>>, %arg10: memref<2x1x32xf32, #tpu.memory_space<vmem>>, %arg11: memref<5x32xf32, #tpu.memory_space<vmem>>, %arg12: memref<5x32xf32, #tpu.memory_space<vmem>>, %arg13: memref<2x8x32xf32, #tpu.memory_space<vmem>>) attributes {dimension_semantics = [#tpu.dimension_semantics<parallel>], iteration_bounds = array<i64: 1>, scalar_prefetch = 0 : i64, scratch_operands = 0 : i64, tpu.core_type = #tpu.core_type<tc>, window_params = [{transform_indices = @transform_0, window_bounds = array<i64: 2, 8, 32>}, {transform_indices = @transform_1, window_bounds = array<i64: 2, 1, 8>}, {pipeline_mode = #tpu.pipeline_mode<synchronous>, transform_indices = @transform_2, window_bounds = array<i64: 2, 32, 96>}, {pipeline_mode = #tpu.pipeline_mode<synchronous>, transform_indices = @transform_3, window_bounds = array<i64: 2, 1, 96>}, {pipeline_mode = #tpu.pipeline_mode<synchronous>, transform_indices = @transform_4, window_bounds = array<i64: 2, 32, 32>}, {pipeline_mode = #tpu.pipeline_mode<synchronous>, transform_indices = @transform_5, window_bounds = array<i64: 2, 1, 32>}, {pipeline_mode = #tpu.pipeline_mode<synchronous>, transform_indices = @transform_6, window_bounds = array<i64: 2, 32, 64>}, {pipeline_mode = #tpu.pipeline_mode<synchronous>, transform_indices = @transform_7, window_bounds = array<i64: 2, 1, 64>}, {pipeline_mode = #tpu.pipeline_mode<synchronous>, transform_indices = @transform_8, window_bounds = array<i64: 2, 64, 32>}, {pipeline_mode = #tpu.pipeline_mode<synchronous>, transform_indices = @transform_9, window_bounds = array<i64: 2, 1, 32>}, {pipeline_mode = #tpu.pipeline_mode<synchronous>, transform_indices = @transform_10, window_bounds = array<i64: 5, 32>}, {pipeline_mode = #tpu.pipeline_mode<synchronous>, transform_indices = @transform_11, window_bounds = array<i64: 5, 32>}, {transform_indices = @transform_12, window_bounds = array<i64: 2, 8, 32>}]} {
    %c0 = arith.constant 0 : index
    %c0_0 = arith.constant 0 : index
    %c0_1 = arith.constant 0 : index
    %0 = vector.load %arg1[%c0, %c0_0, %c0_1] : memref<2x8x32xf32, #tpu.memory_space<vmem>>, vector<2x8x32xf32>
    %1 = vector.shape_cast %0 : vector<2x8x32xf32> to vector<16x32xf32>
    %c0_2 = arith.constant 0 : index
    %c0_3 = arith.constant 0 : index
    %2 = vector.load %arg11[%c0_2, %c0_3] : memref<5x32xf32, #tpu.memory_space<vmem>>, vector<5x32xf32>
    %c0_4 = arith.constant 0 : index
    %c0_5 = arith.constant 0 : index
    %3 = vector.load %arg12[%c0_4, %c0_5] : memref<5x32xf32, #tpu.memory_space<vmem>>, vector<5x32xf32>
    %c0_6 = arith.constant 0 : index
    %c0_7 = arith.constant 0 : index
    %c0_8 = arith.constant 0 : index
    %4 = vector.load %arg2[%c0_6, %c0_7, %c0_8] : memref<2x1x8xf32, #tpu.memory_space<vmem>>, vector<2x1x8xf32>
    %5 = vector.extract_strided_slice %2 {offsets = [0, 0], sizes = [1, 32], strides = [1, 1]} : vector<5x32xf32> to vector<1x32xf32>
    %6 = vector.extract_strided_slice %3 {offsets = [0, 0], sizes = [1, 32], strides = [1, 1]} : vector<5x32xf32> to vector<1x32xf32>
    %7 = vector.extract_strided_slice %2 {offsets = [1, 0], sizes = [1, 32], strides = [1, 1]} : vector<5x32xf32> to vector<1x32xf32>
    %8 = vector.extract_strided_slice %3 {offsets = [1, 0], sizes = [1, 32], strides = [1, 1]} : vector<5x32xf32> to vector<1x32xf32>
    %cst = arith.constant dense<0.000000e+00> : vector<16xf32>
    %9 = vector.multi_reduction <add>, %1, %cst [1] : vector<16x32xf32> to vector<16xf32>
    %10 = vector.shape_cast %9 : vector<16xf32> to vector<16x1xf32>
    %cst_9 = arith.constant 3.200000e+01 : f32
    %11 = vector.broadcast %cst_9 : f32 to vector<16x1xf32>
    %12 = arith.divf %10, %11 : vector<16x1xf32>
    %13 = vector.broadcast %12 : vector<16x1xf32> to vector<16x32xf32>
    %14 = arith.subf %1, %13 : vector<16x32xf32>
    %15 = arith.mulf %14, %14 : vector<16x32xf32>
    %cst_10 = arith.constant dense<0.000000e+00> : vector<16xf32>
    %16 = vector.multi_reduction <add>, %15, %cst_10 [1] : vector<16x32xf32> to vector<16xf32>
    %17 = vector.shape_cast %16 : vector<16xf32> to vector<16x1xf32>
    %cst_11 = arith.constant 3.200000e+01 : f32
    %18 = vector.broadcast %cst_11 : f32 to vector<16x1xf32>
    %19 = arith.divf %17, %18 : vector<16x1xf32>
    %20 = vector.broadcast %12 : vector<16x1xf32> to vector<16x32xf32>
    %21 = arith.subf %1, %20 : vector<16x32xf32>
    %cst_12 = arith.constant 9.99999997E-7 : f32
    %22 = vector.broadcast %cst_12 : f32 to vector<16x1xf32>
    %23 = arith.addf %19, %22 : vector<16x1xf32>
    %24 = math.rsqrt %23 : vector<16x1xf32>
    %25 = vector.broadcast %24 : vector<16x1xf32> to vector<16x32xf32>
    %26 = arith.mulf %21, %25 : vector<16x32xf32>
    %27 = vector.broadcast %5 : vector<1x32xf32> to vector<16x32xf32>
    %28 = arith.mulf %26, %27 : vector<16x32xf32>
    %29 = vector.broadcast %6 : vector<1x32xf32> to vector<16x32xf32>
    %30 = arith.addf %28, %29 : vector<16x32xf32>
    %c0_13 = arith.constant 0 : index
    %c0_14 = arith.constant 0 : index
    %c0_15 = arith.constant 0 : index
    %31 = vector.load %arg3[%c0_13, %c0_14, %c0_15] : memref<2x32x96xf32, #tpu.memory_space<vmem>>, vector<1x32x96xf32>
    %32 = vector.shape_cast %31 : vector<1x32x96xf32> to vector<32x96xf32>
    %cst_16 = arith.constant dense<0.000000e+00> : vector<16x96xf32>
    %33 = tpu.matmul %30, %32, %cst_16 {dimension_numbers = #tpu.dot_dimension_numbers<[1], [0], [0], [1], [0, 0, 1, 1], [], []>} : vector<16x32xf32>, vector<32x96xf32>, vector<16x96xf32> -> vector<16x96xf32>
    %c0_17 = arith.constant 0 : index
    %c0_18 = arith.constant 0 : index
    %c0_19 = arith.constant 0 : index
    %34 = vector.load %arg4[%c0_17, %c0_18, %c0_19] : memref<2x1x96xf32, #tpu.memory_space<vmem>>, vector<1x1x96xf32>
    %35 = vector.shape_cast %34 : vector<1x1x96xf32> to vector<1x96xf32>
    %36 = vector.broadcast %35 : vector<1x96xf32> to vector<16x96xf32>
    %37 = arith.addf %33, %36 : vector<16x96xf32>
    %38 = vector.extract_strided_slice %37 {offsets = [0, 0], sizes = [16, 8], strides = [1, 1]} : vector<16x96xf32> to vector<16x8xf32>
    %39 = vector.shape_cast %38 : vector<16x8xf32> to vector<2x8x8xf32>
    %40 = vector.extract_strided_slice %37 {offsets = [0, 32], sizes = [16, 8], strides = [1, 1]} : vector<16x96xf32> to vector<16x8xf32>
    %41 = vector.shape_cast %40 : vector<16x8xf32> to vector<2x8x8xf32>
    %42 = vector.extract_strided_slice %37 {offsets = [0, 64], sizes = [16, 8], strides = [1, 1]} : vector<16x96xf32> to vector<16x8xf32>
    %43 = vector.shape_cast %42 : vector<16x8xf32> to vector<2x8x8xf32>
    "tpu.trace_start"() <{level = 10 : i32, message = "bqd,bkd->bqk"}> : () -> ()
    %cst_20 = arith.constant dense<0.000000e+00> : vector<2x8x8xf32>
    %44 = tpu.matmul %39, %41, %cst_20 {dimension_numbers = #tpu.dot_dimension_numbers<[2], [2], [1], [1], [0, 0, 0, 1, 1, 1], [0], [0]>} : vector<2x8x8xf32>, vector<2x8x8xf32>, vector<2x8x8xf32> -> vector<2x8x8xf32>
    "tpu.trace_stop"() : () -> ()
    %45 = vector.broadcast %4 : vector<2x1x8xf32> to vector<2x8x8xf32>
    %46 = arith.addf %44, %45 : vector<2x8x8xf32>
    %cst_21 = arith.constant dense<0xFF800000> : vector<2x8xf32>
    %47 = vector.multi_reduction <maximumf>, %46, %cst_21 [2] : vector<2x8x8xf32> to vector<2x8xf32>
    %48 = vector.shape_cast %47 : vector<2x8xf32> to vector<2x8x1xf32>
    %49 = vector.broadcast %48 : vector<2x8x1xf32> to vector<2x8x8xf32>
    %50 = arith.subf %46, %49 : vector<2x8x8xf32>
    %51 = math.exp %50 : vector<2x8x8xf32>
    %cst_22 = arith.constant dense<0.000000e+00> : vector<2x8xf32>
    %52 = vector.multi_reduction <add>, %51, %cst_22 [2] : vector<2x8x8xf32> to vector<2x8xf32>
    %53 = vector.shape_cast %52 : vector<2x8xf32> to vector<2x8x1xf32>
    %54 = tpu.reciprocal %53 {approx = true} : vector<2x8x1xf32> -> vector<2x8x1xf32>
    %55 = vector.broadcast %54 : vector<2x8x1xf32> to vector<2x8x8xf32>
    %56 = arith.mulf %51, %55 : vector<2x8x8xf32>
    "tpu.trace_start"() <{level = 10 : i32, message = "bqk,bkd->bqd"}> : () -> ()
    %cst_23 = arith.constant dense<0.000000e+00> : vector<2x8x8xf32>
    %57 = tpu.matmul %56, %43, %cst_23 {dimension_numbers = #tpu.dot_dimension_numbers<[2], [1], [1], [2], [0, 0, 0, 1, 1, 2], [0], [0]>} : vector<2x8x8xf32>, vector<2x8x8xf32>, vector<2x8x8xf32> -> vector<2x8x8xf32>
    "tpu.trace_stop"() : () -> ()
    %58 = vector.extract_strided_slice %37 {offsets = [0, 8], sizes = [16, 8], strides = [1, 1]} : vector<16x96xf32> to vector<16x8xf32>
    %59 = vector.shape_cast %58 : vector<16x8xf32> to vector<2x8x8xf32>
    %60 = vector.extract_strided_slice %37 {offsets = [0, 40], sizes = [16, 8], strides = [1, 1]} : vector<16x96xf32> to vector<16x8xf32>
    %61 = vector.shape_cast %60 : vector<16x8xf32> to vector<2x8x8xf32>
    %62 = vector.extract_strided_slice %37 {offsets = [0, 72], sizes = [16, 8], strides = [1, 1]} : vector<16x96xf32> to vector<16x8xf32>
    %63 = vector.shape_cast %62 : vector<16x8xf32> to vector<2x8x8xf32>
    "tpu.trace_start"() <{level = 10 : i32, message = "bqd,bkd->bqk"}> : () -> ()
    %cst_24 = arith.constant dense<0.000000e+00> : vector<2x8x8xf32>
    %64 = tpu.matmul %59, %61, %cst_24 {dimension_numbers = #tpu.dot_dimension_numbers<[2], [2], [1], [1], [0, 0, 0, 1, 1, 1], [0], [0]>} : vector<2x8x8xf32>, vector<2x8x8xf32>, vector<2x8x8xf32> -> vector<2x8x8xf32>
    "tpu.trace_stop"() : () -> ()
    %65 = vector.broadcast %4 : vector<2x1x8xf32> to vector<2x8x8xf32>
    %66 = arith.addf %64, %65 : vector<2x8x8xf32>
    %cst_25 = arith.constant dense<0xFF800000> : vector<2x8xf32>
    %67 = vector.multi_reduction <maximumf>, %66, %cst_25 [2] : vector<2x8x8xf32> to vector<2x8xf32>
    %68 = vector.shape_cast %67 : vector<2x8xf32> to vector<2x8x1xf32>
    %69 = vector.broadcast %68 : vector<2x8x1xf32> to vector<2x8x8xf32>
    %70 = arith.subf %66, %69 : vector<2x8x8xf32>
    %71 = math.exp %70 : vector<2x8x8xf32>
    %cst_26 = arith.constant dense<0.000000e+00> : vector<2x8xf32>
    %72 = vector.multi_reduction <add>, %71, %cst_26 [2] : vector<2x8x8xf32> to vector<2x8xf32>
    %73 = vector.shape_cast %72 : vector<2x8xf32> to vector<2x8x1xf32>
    %74 = tpu.reciprocal %73 {approx = true} : vector<2x8x1xf32> -> vector<2x8x1xf32>
    %75 = vector.broadcast %74 : vector<2x8x1xf32> to vector<2x8x8xf32>
    %76 = arith.mulf %71, %75 : vector<2x8x8xf32>
    "tpu.trace_start"() <{level = 10 : i32, message = "bqk,bkd->bqd"}> : () -> ()
    %cst_27 = arith.constant dense<0.000000e+00> : vector<2x8x8xf32>
    %77 = tpu.matmul %76, %63, %cst_27 {dimension_numbers = #tpu.dot_dimension_numbers<[2], [1], [1], [2], [0, 0, 0, 1, 1, 2], [0], [0]>} : vector<2x8x8xf32>, vector<2x8x8xf32>, vector<2x8x8xf32> -> vector<2x8x8xf32>
    "tpu.trace_stop"() : () -> ()
    %78 = vector.extract_strided_slice %37 {offsets = [0, 16], sizes = [16, 8], strides = [1, 1]} : vector<16x96xf32> to vector<16x8xf32>
    %79 = vector.shape_cast %78 : vector<16x8xf32> to vector<2x8x8xf32>
    %80 = vector.extract_strided_slice %37 {offsets = [0, 48], sizes = [16, 8], strides = [1, 1]} : vector<16x96xf32> to vector<16x8xf32>
    %81 = vector.shape_cast %80 : vector<16x8xf32> to vector<2x8x8xf32>
    %82 = vector.extract_strided_slice %37 {offsets = [0, 80], sizes = [16, 8], strides = [1, 1]} : vector<16x96xf32> to vector<16x8xf32>
    %83 = vector.shape_cast %82 : vector<16x8xf32> to vector<2x8x8xf32>
    "tpu.trace_start"() <{level = 10 : i32, message = "bqd,bkd->bqk"}> : () -> ()
    %cst_28 = arith.constant dense<0.000000e+00> : vector<2x8x8xf32>
    %84 = tpu.matmul %79, %81, %cst_28 {dimension_numbers = #tpu.dot_dimension_numbers<[2], [2], [1], [1], [0, 0, 0, 1, 1, 1], [0], [0]>} : vector<2x8x8xf32>, vector<2x8x8xf32>, vector<2x8x8xf32> -> vector<2x8x8xf32>
    "tpu.trace_stop"() : () -> ()
    %85 = vector.broadcast %4 : vector<2x1x8xf32> to vector<2x8x8xf32>
    %86 = arith.addf %84, %85 : vector<2x8x8xf32>
    %cst_29 = arith.constant dense<0xFF800000> : vector<2x8xf32>
    %87 = vector.multi_reduction <maximumf>, %86, %cst_29 [2] : vector<2x8x8xf32> to vector<2x8xf32>
    %88 = vector.shape_cast %87 : vector<2x8xf32> to vector<2x8x1xf32>
    %89 = vector.broadcast %88 : vector<2x8x1xf32> to vector<2x8x8xf32>
    %90 = arith.subf %86, %89 : vector<2x8x8xf32>
    %91 = math.exp %90 : vector<2x8x8xf32>
    %cst_30 = arith.constant dense<0.000000e+00> : vector<2x8xf32>
    %92 = vector.multi_reduction <add>, %91, %cst_30 [2] : vector<2x8x8xf32> to vector<2x8xf32>
    %93 = vector.shape_cast %92 : vector<2x8xf32> to vector<2x8x1xf32>
    %94 = tpu.reciprocal %93 {approx = true} : vector<2x8x1xf32> -> vector<2x8x1xf32>
    %95 = vector.broadcast %94 : vector<2x8x1xf32> to vector<2x8x8xf32>
    %96 = arith.mulf %91, %95 : vector<2x8x8xf32>
    "tpu.trace_start"() <{level = 10 : i32, message = "bqk,bkd->bqd"}> : () -> ()
    %cst_31 = arith.constant dense<0.000000e+00> : vector<2x8x8xf32>
    %97 = tpu.matmul %96, %83, %cst_31 {dimension_numbers = #tpu.dot_dimension_numbers<[2], [1], [1], [2], [0, 0, 0, 1, 1, 2], [0], [0]>} : vector<2x8x8xf32>, vector<2x8x8xf32>, vector<2x8x8xf32> -> vector<2x8x8xf32>
    "tpu.trace_stop"() : () -> ()
    %98 = vector.extract_strided_slice %37 {offsets = [0, 24], sizes = [16, 8], strides = [1, 1]} : vector<16x96xf32> to vector<16x8xf32>
    %99 = vector.shape_cast %98 : vector<16x8xf32> to vector<2x8x8xf32>
    %100 = vector.extract_strided_slice %37 {offsets = [0, 56], sizes = [16, 8], strides = [1, 1]} : vector<16x96xf32> to vector<16x8xf32>
    %101 = vector.shape_cast %100 : vector<16x8xf32> to vector<2x8x8xf32>
    %102 = vector.extract_strided_slice %37 {offsets = [0, 88], sizes = [16, 8], strides = [1, 1]} : vector<16x96xf32> to vector<16x8xf32>
    %103 = vector.shape_cast %102 : vector<16x8xf32> to vector<2x8x8xf32>
    "tpu.trace_start"() <{level = 10 : i32, message = "bqd,bkd->bqk"}> : () -> ()
    %cst_32 = arith.constant dense<0.000000e+00> : vector<2x8x8xf32>
    %104 = tpu.matmul %99, %101, %cst_32 {dimension_numbers = #tpu.dot_dimension_numbers<[2], [2], [1], [1], [0, 0, 0, 1, 1, 1], [0], [0]>} : vector<2x8x8xf32>, vector<2x8x8xf32>, vector<2x8x8xf32> -> vector<2x8x8xf32>
    "tpu.trace_stop"() : () -> ()
    %105 = vector.broadcast %4 : vector<2x1x8xf32> to vector<2x8x8xf32>
    %106 = arith.addf %104, %105 : vector<2x8x8xf32>
    %cst_33 = arith.constant dense<0xFF800000> : vector<2x8xf32>
    %107 = vector.multi_reduction <maximumf>, %106, %cst_33 [2] : vector<2x8x8xf32> to vector<2x8xf32>
    %108 = vector.shape_cast %107 : vector<2x8xf32> to vector<2x8x1xf32>
    %109 = vector.broadcast %108 : vector<2x8x1xf32> to vector<2x8x8xf32>
    %110 = arith.subf %106, %109 : vector<2x8x8xf32>
    %111 = math.exp %110 : vector<2x8x8xf32>
    %cst_34 = arith.constant dense<0.000000e+00> : vector<2x8xf32>
    %112 = vector.multi_reduction <add>, %111, %cst_34 [2] : vector<2x8x8xf32> to vector<2x8xf32>
    %113 = vector.shape_cast %112 : vector<2x8xf32> to vector<2x8x1xf32>
    %114 = tpu.reciprocal %113 {approx = true} : vector<2x8x1xf32> -> vector<2x8x1xf32>
    %115 = vector.broadcast %114 : vector<2x8x1xf32> to vector<2x8x8xf32>
    %116 = arith.mulf %111, %115 : vector<2x8x8xf32>
    "tpu.trace_start"() <{level = 10 : i32, message = "bqk,bkd->bqd"}> : () -> ()
    %cst_35 = arith.constant dense<0.000000e+00> : vector<2x8x8xf32>
    %117 = tpu.matmul %116, %103, %cst_35 {dimension_numbers = #tpu.dot_dimension_numbers<[2], [1], [1], [2], [0, 0, 0, 1, 1, 2], [0], [0]>} : vector<2x8x8xf32>, vector<2x8x8xf32>, vector<2x8x8xf32> -> vector<2x8x8xf32>
    "tpu.trace_stop"() : () -> ()
    %118 = tpu.concatenate %57, %77, %97, %117 in 2 : vector<2x8x8xf32>, vector<2x8x8xf32>, vector<2x8x8xf32>, vector<2x8x8xf32> -> vector<2x8x32xf32>
    %119 = vector.shape_cast %118 : vector<2x8x32xf32> to vector<16x32xf32>
    %c0_36 = arith.constant 0 : index
    %c0_37 = arith.constant 0 : index
    %c0_38 = arith.constant 0 : index
    %120 = vector.load %arg5[%c0_36, %c0_37, %c0_38] : memref<2x32x32xf32, #tpu.memory_space<vmem>>, vector<1x32x32xf32>
    %121 = vector.shape_cast %120 : vector<1x32x32xf32> to vector<32x32xf32>
    %cst_39 = arith.constant dense<0.000000e+00> : vector<16x32xf32>
    %122 = tpu.matmul %119, %121, %cst_39 {dimension_numbers = #tpu.dot_dimension_numbers<[1], [0], [0], [1], [0, 0, 1, 1], [], []>} : vector<16x32xf32>, vector<32x32xf32>, vector<16x32xf32> -> vector<16x32xf32>
    %c0_40 = arith.constant 0 : index
    %c0_41 = arith.constant 0 : index
    %c0_42 = arith.constant 0 : index
    %123 = vector.load %arg6[%c0_40, %c0_41, %c0_42] : memref<2x1x32xf32, #tpu.memory_space<vmem>>, vector<1x1x32xf32>
    %124 = vector.shape_cast %123 : vector<1x1x32xf32> to vector<1x32xf32>
    %125 = vector.broadcast %124 : vector<1x32xf32> to vector<16x32xf32>
    %126 = arith.addf %122, %125 : vector<16x32xf32>
    %127 = arith.addf %126, %1 : vector<16x32xf32>
    %cst_43 = arith.constant dense<0.000000e+00> : vector<16xf32>
    %128 = vector.multi_reduction <add>, %127, %cst_43 [1] : vector<16x32xf32> to vector<16xf32>
    %129 = vector.shape_cast %128 : vector<16xf32> to vector<16x1xf32>
    %cst_44 = arith.constant 3.200000e+01 : f32
    %130 = vector.broadcast %cst_44 : f32 to vector<16x1xf32>
    %131 = arith.divf %129, %130 : vector<16x1xf32>
    %132 = vector.broadcast %131 : vector<16x1xf32> to vector<16x32xf32>
    %133 = arith.subf %127, %132 : vector<16x32xf32>
    %134 = arith.mulf %133, %133 : vector<16x32xf32>
    %cst_45 = arith.constant dense<0.000000e+00> : vector<16xf32>
    %135 = vector.multi_reduction <add>, %134, %cst_45 [1] : vector<16x32xf32> to vector<16xf32>
    %136 = vector.shape_cast %135 : vector<16xf32> to vector<16x1xf32>
    %cst_46 = arith.constant 3.200000e+01 : f32
    %137 = vector.broadcast %cst_46 : f32 to vector<16x1xf32>
    %138 = arith.divf %136, %137 : vector<16x1xf32>
    %139 = vector.broadcast %131 : vector<16x1xf32> to vector<16x32xf32>
    %140 = arith.subf %127, %139 : vector<16x32xf32>
    %cst_47 = arith.constant 9.99999997E-7 : f32
    %141 = vector.broadcast %cst_47 : f32 to vector<16x1xf32>
    %142 = arith.addf %138, %141 : vector<16x1xf32>
    %143 = math.rsqrt %142 : vector<16x1xf32>
    %144 = vector.broadcast %143 : vector<16x1xf32> to vector<16x32xf32>
    %145 = arith.mulf %140, %144 : vector<16x32xf32>
    %146 = vector.broadcast %7 : vector<1x32xf32> to vector<16x32xf32>
    %147 = arith.mulf %145, %146 : vector<16x32xf32>
    %148 = vector.broadcast %8 : vector<1x32xf32> to vector<16x32xf32>
    %149 = arith.addf %147, %148 : vector<16x32xf32>
    %c0_48 = arith.constant 0 : index
    %c0_49 = arith.constant 0 : index
    %c0_50 = arith.constant 0 : index
    %150 = vector.load %arg7[%c0_48, %c0_49, %c0_50] : memref<2x32x64xf32, #tpu.memory_space<vmem>>, vector<1x32x64xf32>
    %151 = vector.shape_cast %150 : vector<1x32x64xf32> to vector<32x64xf32>
    %cst_51 = arith.constant dense<0.000000e+00> : vector<16x64xf32>
    %152 = tpu.matmul %149, %151, %cst_51 {dimension_numbers = #tpu.dot_dimension_numbers<[1], [0], [0], [1], [0, 0, 1, 1], [], []>} : vector<16x32xf32>, vector<32x64xf32>, vector<16x64xf32> -> vector<16x64xf32>
    %c0_52 = arith.constant 0 : index
    %c0_53 = arith.constant 0 : index
    %c0_54 = arith.constant 0 : index
    %153 = vector.load %arg8[%c0_52, %c0_53, %c0_54] : memref<2x1x64xf32, #tpu.memory_space<vmem>>, vector<1x1x64xf32>
    %154 = vector.shape_cast %153 : vector<1x1x64xf32> to vector<1x64xf32>
    %155 = vector.broadcast %154 : vector<1x64xf32> to vector<16x64xf32>
    %156 = arith.addf %152, %155 : vector<16x64xf32>
    %cst_55 = arith.constant 0.000000e+00 : f32
    %157 = vector.broadcast %cst_55 : f32 to vector<16x64xf32>
    %158 = arith.maximumf %156, %157 : vector<16x64xf32>
    %c0_56 = arith.constant 0 : index
    %c0_57 = arith.constant 0 : index
    %c0_58 = arith.constant 0 : index
    %159 = vector.load %arg9[%c0_56, %c0_57, %c0_58] : memref<2x64x32xf32, #tpu.memory_space<vmem>>, vector<1x64x32xf32>
    %160 = vector.shape_cast %159 : vector<1x64x32xf32> to vector<64x32xf32>
    %cst_59 = arith.constant dense<0.000000e+00> : vector<16x32xf32>
    %161 = tpu.matmul %158, %160, %cst_59 {dimension_numbers = #tpu.dot_dimension_numbers<[1], [0], [0], [1], [0, 0, 1, 1], [], []>} : vector<16x64xf32>, vector<64x32xf32>, vector<16x32xf32> -> vector<16x32xf32>
    %c0_60 = arith.constant 0 : index
    %c0_61 = arith.constant 0 : index
    %c0_62 = arith.constant 0 : index
    %162 = vector.load %arg10[%c0_60, %c0_61, %c0_62] : memref<2x1x32xf32, #tpu.memory_space<vmem>>, vector<1x1x32xf32>
    %163 = vector.shape_cast %162 : vector<1x1x32xf32> to vector<1x32xf32>
    %164 = vector.broadcast %163 : vector<1x32xf32> to vector<16x32xf32>
    %165 = arith.addf %161, %164 : vector<16x32xf32>
    %166 = arith.addf %165, %127 : vector<16x32xf32>
    %167 = vector.extract_strided_slice %2 {offsets = [2, 0], sizes = [1, 32], strides = [1, 1]} : vector<5x32xf32> to vector<1x32xf32>
    %168 = vector.extract_strided_slice %3 {offsets = [2, 0], sizes = [1, 32], strides = [1, 1]} : vector<5x32xf32> to vector<1x32xf32>
    %169 = vector.extract_strided_slice %2 {offsets = [3, 0], sizes = [1, 32], strides = [1, 1]} : vector<5x32xf32> to vector<1x32xf32>
    %170 = vector.extract_strided_slice %3 {offsets = [3, 0], sizes = [1, 32], strides = [1, 1]} : vector<5x32xf32> to vector<1x32xf32>
    %cst_63 = arith.constant dense<0.000000e+00> : vector<16xf32>
    %171 = vector.multi_reduction <add>, %166, %cst_63 [1] : vector<16x32xf32> to vector<16xf32>
    %172 = vector.shape_cast %171 : vector<16xf32> to vector<16x1xf32>
    %cst_64 = arith.constant 3.200000e+01 : f32
    %173 = vector.broadcast %cst_64 : f32 to vector<16x1xf32>
    %174 = arith.divf %172, %173 : vector<16x1xf32>
    %175 = vector.broadcast %174 : vector<16x1xf32> to vector<16x32xf32>
    %176 = arith.subf %166, %175 : vector<16x32xf32>
    %177 = arith.mulf %176, %176 : vector<16x32xf32>
    %cst_65 = arith.constant dense<0.000000e+00> : vector<16xf32>
    %178 = vector.multi_reduction <add>, %177, %cst_65 [1] : vector<16x32xf32> to vector<16xf32>
    %179 = vector.shape_cast %178 : vector<16xf32> to vector<16x1xf32>
    %cst_66 = arith.constant 3.200000e+01 : f32
    %180 = vector.broadcast %cst_66 : f32 to vector<16x1xf32>
    %181 = arith.divf %179, %180 : vector<16x1xf32>
    %182 = vector.broadcast %174 : vector<16x1xf32> to vector<16x32xf32>
    %183 = arith.subf %166, %182 : vector<16x32xf32>
    %cst_67 = arith.constant 9.99999997E-7 : f32
    %184 = vector.broadcast %cst_67 : f32 to vector<16x1xf32>
    %185 = arith.addf %181, %184 : vector<16x1xf32>
    %186 = math.rsqrt %185 : vector<16x1xf32>
    %187 = vector.broadcast %186 : vector<16x1xf32> to vector<16x32xf32>
    %188 = arith.mulf %183, %187 : vector<16x32xf32>
    %189 = vector.broadcast %167 : vector<1x32xf32> to vector<16x32xf32>
    %190 = arith.mulf %188, %189 : vector<16x32xf32>
    %191 = vector.broadcast %168 : vector<1x32xf32> to vector<16x32xf32>
    %192 = arith.addf %190, %191 : vector<16x32xf32>
    %c1 = arith.constant 1 : index
    %c0_68 = arith.constant 0 : index
    %c0_69 = arith.constant 0 : index
    %193 = vector.load %arg3[%c1, %c0_68, %c0_69] : memref<2x32x96xf32, #tpu.memory_space<vmem>>, vector<1x32x96xf32>
    %194 = vector.shape_cast %193 : vector<1x32x96xf32> to vector<32x96xf32>
    %cst_70 = arith.constant dense<0.000000e+00> : vector<16x96xf32>
    %195 = tpu.matmul %192, %194, %cst_70 {dimension_numbers = #tpu.dot_dimension_numbers<[1], [0], [0], [1], [0, 0, 1, 1], [], []>} : vector<16x32xf32>, vector<32x96xf32>, vector<16x96xf32> -> vector<16x96xf32>
    %c1_71 = arith.constant 1 : index
    %c0_72 = arith.constant 0 : index
    %c0_73 = arith.constant 0 : index
    %196 = vector.load %arg4[%c1_71, %c0_72, %c0_73] : memref<2x1x96xf32, #tpu.memory_space<vmem>>, vector<1x1x96xf32>
    %197 = vector.shape_cast %196 : vector<1x1x96xf32> to vector<1x96xf32>
    %198 = vector.broadcast %197 : vector<1x96xf32> to vector<16x96xf32>
    %199 = arith.addf %195, %198 : vector<16x96xf32>
    %200 = vector.extract_strided_slice %199 {offsets = [0, 0], sizes = [16, 8], strides = [1, 1]} : vector<16x96xf32> to vector<16x8xf32>
    %201 = vector.shape_cast %200 : vector<16x8xf32> to vector<2x8x8xf32>
    %202 = vector.extract_strided_slice %199 {offsets = [0, 32], sizes = [16, 8], strides = [1, 1]} : vector<16x96xf32> to vector<16x8xf32>
    %203 = vector.shape_cast %202 : vector<16x8xf32> to vector<2x8x8xf32>
    %204 = vector.extract_strided_slice %199 {offsets = [0, 64], sizes = [16, 8], strides = [1, 1]} : vector<16x96xf32> to vector<16x8xf32>
    %205 = vector.shape_cast %204 : vector<16x8xf32> to vector<2x8x8xf32>
    "tpu.trace_start"() <{level = 10 : i32, message = "bqd,bkd->bqk"}> : () -> ()
    %cst_74 = arith.constant dense<0.000000e+00> : vector<2x8x8xf32>
    %206 = tpu.matmul %201, %203, %cst_74 {dimension_numbers = #tpu.dot_dimension_numbers<[2], [2], [1], [1], [0, 0, 0, 1, 1, 1], [0], [0]>} : vector<2x8x8xf32>, vector<2x8x8xf32>, vector<2x8x8xf32> -> vector<2x8x8xf32>
    "tpu.trace_stop"() : () -> ()
    %207 = vector.broadcast %4 : vector<2x1x8xf32> to vector<2x8x8xf32>
    %208 = arith.addf %206, %207 : vector<2x8x8xf32>
    %cst_75 = arith.constant dense<0xFF800000> : vector<2x8xf32>
    %209 = vector.multi_reduction <maximumf>, %208, %cst_75 [2] : vector<2x8x8xf32> to vector<2x8xf32>
    %210 = vector.shape_cast %209 : vector<2x8xf32> to vector<2x8x1xf32>
    %211 = vector.broadcast %210 : vector<2x8x1xf32> to vector<2x8x8xf32>
    %212 = arith.subf %208, %211 : vector<2x8x8xf32>
    %213 = math.exp %212 : vector<2x8x8xf32>
    %cst_76 = arith.constant dense<0.000000e+00> : vector<2x8xf32>
    %214 = vector.multi_reduction <add>, %213, %cst_76 [2] : vector<2x8x8xf32> to vector<2x8xf32>
    %215 = vector.shape_cast %214 : vector<2x8xf32> to vector<2x8x1xf32>
    %216 = tpu.reciprocal %215 {approx = true} : vector<2x8x1xf32> -> vector<2x8x1xf32>
    %217 = vector.broadcast %216 : vector<2x8x1xf32> to vector<2x8x8xf32>
    %218 = arith.mulf %213, %217 : vector<2x8x8xf32>
    "tpu.trace_start"() <{level = 10 : i32, message = "bqk,bkd->bqd"}> : () -> ()
    %cst_77 = arith.constant dense<0.000000e+00> : vector<2x8x8xf32>
    %219 = tpu.matmul %218, %205, %cst_77 {dimension_numbers = #tpu.dot_dimension_numbers<[2], [1], [1], [2], [0, 0, 0, 1, 1, 2], [0], [0]>} : vector<2x8x8xf32>, vector<2x8x8xf32>, vector<2x8x8xf32> -> vector<2x8x8xf32>
    "tpu.trace_stop"() : () -> ()
    %220 = vector.extract_strided_slice %199 {offsets = [0, 8], sizes = [16, 8], strides = [1, 1]} : vector<16x96xf32> to vector<16x8xf32>
    %221 = vector.shape_cast %220 : vector<16x8xf32> to vector<2x8x8xf32>
    %222 = vector.extract_strided_slice %199 {offsets = [0, 40], sizes = [16, 8], strides = [1, 1]} : vector<16x96xf32> to vector<16x8xf32>
    %223 = vector.shape_cast %222 : vector<16x8xf32> to vector<2x8x8xf32>
    %224 = vector.extract_strided_slice %199 {offsets = [0, 72], sizes = [16, 8], strides = [1, 1]} : vector<16x96xf32> to vector<16x8xf32>
    %225 = vector.shape_cast %224 : vector<16x8xf32> to vector<2x8x8xf32>
    "tpu.trace_start"() <{level = 10 : i32, message = "bqd,bkd->bqk"}> : () -> ()
    %cst_78 = arith.constant dense<0.000000e+00> : vector<2x8x8xf32>
    %226 = tpu.matmul %221, %223, %cst_78 {dimension_numbers = #tpu.dot_dimension_numbers<[2], [2], [1], [1], [0, 0, 0, 1, 1, 1], [0], [0]>} : vector<2x8x8xf32>, vector<2x8x8xf32>, vector<2x8x8xf32> -> vector<2x8x8xf32>
    "tpu.trace_stop"() : () -> ()
    %227 = vector.broadcast %4 : vector<2x1x8xf32> to vector<2x8x8xf32>
    %228 = arith.addf %226, %227 : vector<2x8x8xf32>
    %cst_79 = arith.constant dense<0xFF800000> : vector<2x8xf32>
    %229 = vector.multi_reduction <maximumf>, %228, %cst_79 [2] : vector<2x8x8xf32> to vector<2x8xf32>
    %230 = vector.shape_cast %229 : vector<2x8xf32> to vector<2x8x1xf32>
    %231 = vector.broadcast %230 : vector<2x8x1xf32> to vector<2x8x8xf32>
    %232 = arith.subf %228, %231 : vector<2x8x8xf32>
    %233 = math.exp %232 : vector<2x8x8xf32>
    %cst_80 = arith.constant dense<0.000000e+00> : vector<2x8xf32>
    %234 = vector.multi_reduction <add>, %233, %cst_80 [2] : vector<2x8x8xf32> to vector<2x8xf32>
    %235 = vector.shape_cast %234 : vector<2x8xf32> to vector<2x8x1xf32>
    %236 = tpu.reciprocal %235 {approx = true} : vector<2x8x1xf32> -> vector<2x8x1xf32>
    %237 = vector.broadcast %236 : vector<2x8x1xf32> to vector<2x8x8xf32>
    %238 = arith.mulf %233, %237 : vector<2x8x8xf32>
    "tpu.trace_start"() <{level = 10 : i32, message = "bqk,bkd->bqd"}> : () -> ()
    %cst_81 = arith.constant dense<0.000000e+00> : vector<2x8x8xf32>
    %239 = tpu.matmul %238, %225, %cst_81 {dimension_numbers = #tpu.dot_dimension_numbers<[2], [1], [1], [2], [0, 0, 0, 1, 1, 2], [0], [0]>} : vector<2x8x8xf32>, vector<2x8x8xf32>, vector<2x8x8xf32> -> vector<2x8x8xf32>
    "tpu.trace_stop"() : () -> ()
    %240 = vector.extract_strided_slice %199 {offsets = [0, 16], sizes = [16, 8], strides = [1, 1]} : vector<16x96xf32> to vector<16x8xf32>
    %241 = vector.shape_cast %240 : vector<16x8xf32> to vector<2x8x8xf32>
    %242 = vector.extract_strided_slice %199 {offsets = [0, 48], sizes = [16, 8], strides = [1, 1]} : vector<16x96xf32> to vector<16x8xf32>
    %243 = vector.shape_cast %242 : vector<16x8xf32> to vector<2x8x8xf32>
    %244 = vector.extract_strided_slice %199 {offsets = [0, 80], sizes = [16, 8], strides = [1, 1]} : vector<16x96xf32> to vector<16x8xf32>
    %245 = vector.shape_cast %244 : vector<16x8xf32> to vector<2x8x8xf32>
    "tpu.trace_start"() <{level = 10 : i32, message = "bqd,bkd->bqk"}> : () -> ()
    %cst_82 = arith.constant dense<0.000000e+00> : vector<2x8x8xf32>
    %246 = tpu.matmul %241, %243, %cst_82 {dimension_numbers = #tpu.dot_dimension_numbers<[2], [2], [1], [1], [0, 0, 0, 1, 1, 1], [0], [0]>} : vector<2x8x8xf32>, vector<2x8x8xf32>, vector<2x8x8xf32> -> vector<2x8x8xf32>
    "tpu.trace_stop"() : () -> ()
    %247 = vector.broadcast %4 : vector<2x1x8xf32> to vector<2x8x8xf32>
    %248 = arith.addf %246, %247 : vector<2x8x8xf32>
    %cst_83 = arith.constant dense<0xFF800000> : vector<2x8xf32>
    %249 = vector.multi_reduction <maximumf>, %248, %cst_83 [2] : vector<2x8x8xf32> to vector<2x8xf32>
    %250 = vector.shape_cast %249 : vector<2x8xf32> to vector<2x8x1xf32>
    %251 = vector.broadcast %250 : vector<2x8x1xf32> to vector<2x8x8xf32>
    %252 = arith.subf %248, %251 : vector<2x8x8xf32>
    %253 = math.exp %252 : vector<2x8x8xf32>
    %cst_84 = arith.constant dense<0.000000e+00> : vector<2x8xf32>
    %254 = vector.multi_reduction <add>, %253, %cst_84 [2] : vector<2x8x8xf32> to vector<2x8xf32>
    %255 = vector.shape_cast %254 : vector<2x8xf32> to vector<2x8x1xf32>
    %256 = tpu.reciprocal %255 {approx = true} : vector<2x8x1xf32> -> vector<2x8x1xf32>
    %257 = vector.broadcast %256 : vector<2x8x1xf32> to vector<2x8x8xf32>
    %258 = arith.mulf %253, %257 : vector<2x8x8xf32>
    "tpu.trace_start"() <{level = 10 : i32, message = "bqk,bkd->bqd"}> : () -> ()
    %cst_85 = arith.constant dense<0.000000e+00> : vector<2x8x8xf32>
    %259 = tpu.matmul %258, %245, %cst_85 {dimension_numbers = #tpu.dot_dimension_numbers<[2], [1], [1], [2], [0, 0, 0, 1, 1, 2], [0], [0]>} : vector<2x8x8xf32>, vector<2x8x8xf32>, vector<2x8x8xf32> -> vector<2x8x8xf32>
    "tpu.trace_stop"() : () -> ()
    %260 = vector.extract_strided_slice %199 {offsets = [0, 24], sizes = [16, 8], strides = [1, 1]} : vector<16x96xf32> to vector<16x8xf32>
    %261 = vector.shape_cast %260 : vector<16x8xf32> to vector<2x8x8xf32>
    %262 = vector.extract_strided_slice %199 {offsets = [0, 56], sizes = [16, 8], strides = [1, 1]} : vector<16x96xf32> to vector<16x8xf32>
    %263 = vector.shape_cast %262 : vector<16x8xf32> to vector<2x8x8xf32>
    %264 = vector.extract_strided_slice %199 {offsets = [0, 88], sizes = [16, 8], strides = [1, 1]} : vector<16x96xf32> to vector<16x8xf32>
    %265 = vector.shape_cast %264 : vector<16x8xf32> to vector<2x8x8xf32>
    "tpu.trace_start"() <{level = 10 : i32, message = "bqd,bkd->bqk"}> : () -> ()
    %cst_86 = arith.constant dense<0.000000e+00> : vector<2x8x8xf32>
    %266 = tpu.matmul %261, %263, %cst_86 {dimension_numbers = #tpu.dot_dimension_numbers<[2], [2], [1], [1], [0, 0, 0, 1, 1, 1], [0], [0]>} : vector<2x8x8xf32>, vector<2x8x8xf32>, vector<2x8x8xf32> -> vector<2x8x8xf32>
    "tpu.trace_stop"() : () -> ()
    %267 = vector.broadcast %4 : vector<2x1x8xf32> to vector<2x8x8xf32>
    %268 = arith.addf %266, %267 : vector<2x8x8xf32>
    %cst_87 = arith.constant dense<0xFF800000> : vector<2x8xf32>
    %269 = vector.multi_reduction <maximumf>, %268, %cst_87 [2] : vector<2x8x8xf32> to vector<2x8xf32>
    %270 = vector.shape_cast %269 : vector<2x8xf32> to vector<2x8x1xf32>
    %271 = vector.broadcast %270 : vector<2x8x1xf32> to vector<2x8x8xf32>
    %272 = arith.subf %268, %271 : vector<2x8x8xf32>
    %273 = math.exp %272 : vector<2x8x8xf32>
    %cst_88 = arith.constant dense<0.000000e+00> : vector<2x8xf32>
    %274 = vector.multi_reduction <add>, %273, %cst_88 [2] : vector<2x8x8xf32> to vector<2x8xf32>
    %275 = vector.shape_cast %274 : vector<2x8xf32> to vector<2x8x1xf32>
    %276 = tpu.reciprocal %275 {approx = true} : vector<2x8x1xf32> -> vector<2x8x1xf32>
    %277 = vector.broadcast %276 : vector<2x8x1xf32> to vector<2x8x8xf32>
    %278 = arith.mulf %273, %277 : vector<2x8x8xf32>
    "tpu.trace_start"() <{level = 10 : i32, message = "bqk,bkd->bqd"}> : () -> ()
    %cst_89 = arith.constant dense<0.000000e+00> : vector<2x8x8xf32>
    %279 = tpu.matmul %278, %265, %cst_89 {dimension_numbers = #tpu.dot_dimension_numbers<[2], [1], [1], [2], [0, 0, 0, 1, 1, 2], [0], [0]>} : vector<2x8x8xf32>, vector<2x8x8xf32>, vector<2x8x8xf32> -> vector<2x8x8xf32>
    "tpu.trace_stop"() : () -> ()
    %280 = tpu.concatenate %219, %239, %259, %279 in 2 : vector<2x8x8xf32>, vector<2x8x8xf32>, vector<2x8x8xf32>, vector<2x8x8xf32> -> vector<2x8x32xf32>
    %281 = vector.shape_cast %280 : vector<2x8x32xf32> to vector<16x32xf32>
    %c1_90 = arith.constant 1 : index
    %c0_91 = arith.constant 0 : index
    %c0_92 = arith.constant 0 : index
    %282 = vector.load %arg5[%c1_90, %c0_91, %c0_92] : memref<2x32x32xf32, #tpu.memory_space<vmem>>, vector<1x32x32xf32>
    %283 = vector.shape_cast %282 : vector<1x32x32xf32> to vector<32x32xf32>
    %cst_93 = arith.constant dense<0.000000e+00> : vector<16x32xf32>
    %284 = tpu.matmul %281, %283, %cst_93 {dimension_numbers = #tpu.dot_dimension_numbers<[1], [0], [0], [1], [0, 0, 1, 1], [], []>} : vector<16x32xf32>, vector<32x32xf32>, vector<16x32xf32> -> vector<16x32xf32>
    %c1_94 = arith.constant 1 : index
    %c0_95 = arith.constant 0 : index
    %c0_96 = arith.constant 0 : index
    %285 = vector.load %arg6[%c1_94, %c0_95, %c0_96] : memref<2x1x32xf32, #tpu.memory_space<vmem>>, vector<1x1x32xf32>
    %286 = vector.shape_cast %285 : vector<1x1x32xf32> to vector<1x32xf32>
    %287 = vector.broadcast %286 : vector<1x32xf32> to vector<16x32xf32>
    %288 = arith.addf %284, %287 : vector<16x32xf32>
    %289 = arith.addf %288, %166 : vector<16x32xf32>
    %cst_97 = arith.constant dense<0.000000e+00> : vector<16xf32>
    %290 = vector.multi_reduction <add>, %289, %cst_97 [1] : vector<16x32xf32> to vector<16xf32>
    %291 = vector.shape_cast %290 : vector<16xf32> to vector<16x1xf32>
    %cst_98 = arith.constant 3.200000e+01 : f32
    %292 = vector.broadcast %cst_98 : f32 to vector<16x1xf32>
    %293 = arith.divf %291, %292 : vector<16x1xf32>
    %294 = vector.broadcast %293 : vector<16x1xf32> to vector<16x32xf32>
    %295 = arith.subf %289, %294 : vector<16x32xf32>
    %296 = arith.mulf %295, %295 : vector<16x32xf32>
    %cst_99 = arith.constant dense<0.000000e+00> : vector<16xf32>
    %297 = vector.multi_reduction <add>, %296, %cst_99 [1] : vector<16x32xf32> to vector<16xf32>
    %298 = vector.shape_cast %297 : vector<16xf32> to vector<16x1xf32>
    %cst_100 = arith.constant 3.200000e+01 : f32
    %299 = vector.broadcast %cst_100 : f32 to vector<16x1xf32>
    %300 = arith.divf %298, %299 : vector<16x1xf32>
    %301 = vector.broadcast %293 : vector<16x1xf32> to vector<16x32xf32>
    %302 = arith.subf %289, %301 : vector<16x32xf32>
    %cst_101 = arith.constant 9.99999997E-7 : f32
    %303 = vector.broadcast %cst_101 : f32 to vector<16x1xf32>
    %304 = arith.addf %300, %303 : vector<16x1xf32>
    %305 = math.rsqrt %304 : vector<16x1xf32>
    %306 = vector.broadcast %305 : vector<16x1xf32> to vector<16x32xf32>
    %307 = arith.mulf %302, %306 : vector<16x32xf32>
    %308 = vector.broadcast %169 : vector<1x32xf32> to vector<16x32xf32>
    %309 = arith.mulf %307, %308 : vector<16x32xf32>
    %310 = vector.broadcast %170 : vector<1x32xf32> to vector<16x32xf32>
    %311 = arith.addf %309, %310 : vector<16x32xf32>
    %c1_102 = arith.constant 1 : index
    %c0_103 = arith.constant 0 : index
    %c0_104 = arith.constant 0 : index
    %312 = vector.load %arg7[%c1_102, %c0_103, %c0_104] : memref<2x32x64xf32, #tpu.memory_space<vmem>>, vector<1x32x64xf32>
    %313 = vector.shape_cast %312 : vector<1x32x64xf32> to vector<32x64xf32>
    %cst_105 = arith.constant dense<0.000000e+00> : vector<16x64xf32>
    %314 = tpu.matmul %311, %313, %cst_105 {dimension_numbers = #tpu.dot_dimension_numbers<[1], [0], [0], [1], [0, 0, 1, 1], [], []>} : vector<16x32xf32>, vector<32x64xf32>, vector<16x64xf32> -> vector<16x64xf32>
    %c1_106 = arith.constant 1 : index
    %c0_107 = arith.constant 0 : index
    %c0_108 = arith.constant 0 : index
    %315 = vector.load %arg8[%c1_106, %c0_107, %c0_108] : memref<2x1x64xf32, #tpu.memory_space<vmem>>, vector<1x1x64xf32>
    %316 = vector.shape_cast %315 : vector<1x1x64xf32> to vector<1x64xf32>
    %317 = vector.broadcast %316 : vector<1x64xf32> to vector<16x64xf32>
    %318 = arith.addf %314, %317 : vector<16x64xf32>
    %cst_109 = arith.constant 0.000000e+00 : f32
    %319 = vector.broadcast %cst_109 : f32 to vector<16x64xf32>
    %320 = arith.maximumf %318, %319 : vector<16x64xf32>
    %c1_110 = arith.constant 1 : index
    %c0_111 = arith.constant 0 : index
    %c0_112 = arith.constant 0 : index
    %321 = vector.load %arg9[%c1_110, %c0_111, %c0_112] : memref<2x64x32xf32, #tpu.memory_space<vmem>>, vector<1x64x32xf32>
    %322 = vector.shape_cast %321 : vector<1x64x32xf32> to vector<64x32xf32>
    %cst_113 = arith.constant dense<0.000000e+00> : vector<16x32xf32>
    %323 = tpu.matmul %320, %322, %cst_113 {dimension_numbers = #tpu.dot_dimension_numbers<[1], [0], [0], [1], [0, 0, 1, 1], [], []>} : vector<16x64xf32>, vector<64x32xf32>, vector<16x32xf32> -> vector<16x32xf32>
    %c1_114 = arith.constant 1 : index
    %c0_115 = arith.constant 0 : index
    %c0_116 = arith.constant 0 : index
    %324 = vector.load %arg10[%c1_114, %c0_115, %c0_116] : memref<2x1x32xf32, #tpu.memory_space<vmem>>, vector<1x1x32xf32>
    %325 = vector.shape_cast %324 : vector<1x1x32xf32> to vector<1x32xf32>
    %326 = vector.broadcast %325 : vector<1x32xf32> to vector<16x32xf32>
    %327 = arith.addf %323, %326 : vector<16x32xf32>
    %328 = arith.addf %327, %289 : vector<16x32xf32>
    %329 = vector.extract_strided_slice %2 {offsets = [4, 0], sizes = [1, 32], strides = [1, 1]} : vector<5x32xf32> to vector<1x32xf32>
    %330 = vector.extract_strided_slice %3 {offsets = [4, 0], sizes = [1, 32], strides = [1, 1]} : vector<5x32xf32> to vector<1x32xf32>
    %cst_117 = arith.constant dense<0.000000e+00> : vector<16xf32>
    %331 = vector.multi_reduction <add>, %328, %cst_117 [1] : vector<16x32xf32> to vector<16xf32>
    %332 = vector.shape_cast %331 : vector<16xf32> to vector<16x1xf32>
    %cst_118 = arith.constant 3.200000e+01 : f32
    %333 = vector.broadcast %cst_118 : f32 to vector<16x1xf32>
    %334 = arith.divf %332, %333 : vector<16x1xf32>
    %335 = vector.broadcast %334 : vector<16x1xf32> to vector<16x32xf32>
    %336 = arith.subf %328, %335 : vector<16x32xf32>
    %337 = arith.mulf %336, %336 : vector<16x32xf32>
    %cst_119 = arith.constant dense<0.000000e+00> : vector<16xf32>
    %338 = vector.multi_reduction <add>, %337, %cst_119 [1] : vector<16x32xf32> to vector<16xf32>
    %339 = vector.shape_cast %338 : vector<16xf32> to vector<16x1xf32>
    %cst_120 = arith.constant 3.200000e+01 : f32
    %340 = vector.broadcast %cst_120 : f32 to vector<16x1xf32>
    %341 = arith.divf %339, %340 : vector<16x1xf32>
    %342 = vector.broadcast %334 : vector<16x1xf32> to vector<16x32xf32>
    %343 = arith.subf %328, %342 : vector<16x32xf32>
    %cst_121 = arith.constant 9.99999997E-7 : f32
    %344 = vector.broadcast %cst_121 : f32 to vector<16x1xf32>
    %345 = arith.addf %341, %344 : vector<16x1xf32>
    %346 = math.rsqrt %345 : vector<16x1xf32>
    %347 = vector.broadcast %346 : vector<16x1xf32> to vector<16x32xf32>
    %348 = arith.mulf %343, %347 : vector<16x32xf32>
    %349 = vector.broadcast %329 : vector<1x32xf32> to vector<16x32xf32>
    %350 = arith.mulf %348, %349 : vector<16x32xf32>
    %351 = vector.broadcast %330 : vector<1x32xf32> to vector<16x32xf32>
    %352 = arith.addf %350, %351 : vector<16x32xf32>
    %353 = vector.shape_cast %352 : vector<16x32xf32> to vector<2x8x32xf32>
    %c0_122 = arith.constant 0 : index
    %c0_123 = arith.constant 0 : index
    %c0_124 = arith.constant 0 : index
    %354 = vector.load %arg13[%c0_122, %c0_123, %c0_124] : memref<2x8x32xf32, #tpu.memory_space<vmem>>, vector<2x8x32xf32>
    tpu.vector_store %arg13[%c0_122, %c0_123, %c0_124], %353 {strides = array<i32>} : memref<2x8x32xf32, #tpu.memory_space<vmem>>, vector<2x8x32xf32>,
    return
  }
  func.func @transform_0(%arg0: i32) -> (i32, i32, i32) {
    %c0_i32 = arith.constant 0 : i32
    %c0_i32_0 = arith.constant 0 : i32
    %c0_i32_1 = arith.constant 0 : i32
    return %arg0, %c0_i32, %c0_i32_0 : i32, i32, i32
  }
  func.func @transform_1(%arg0: i32) -> (i32, i32, i32) {
    %c0_i32 = arith.constant 0 : i32
    %c0_i32_0 = arith.constant 0 : i32
    %c0_i32_1 = arith.constant 0 : i32
    return %arg0, %c0_i32, %c0_i32_0 : i32, i32, i32
  }
  func.func @transform_2(%arg0: i32) -> (i32, i32, i32) {
    %c0_i32 = arith.constant 0 : i32
    %c0_i32_0 = arith.constant 0 : i32
    %c0_i32_1 = arith.constant 0 : i32
    %c0_i32_2 = arith.constant 0 : i32
    return %c0_i32, %c0_i32_0, %c0_i32_1 : i32, i32, i32
  }
  func.func @transform_3(%arg0: i32) -> (i32, i32, i32) {
    %c0_i32 = arith.constant 0 : i32
    %c0_i32_0 = arith.constant 0 : i32
    %c0_i32_1 = arith.constant 0 : i32
    %c0_i32_2 = arith.constant 0 : i32
    return %c0_i32, %c0_i32_0, %c0_i32_1 : i32, i32, i32
  }
  func.func @transform_4(%arg0: i32) -> (i32, i32, i32) {
    %c0_i32 = arith.constant 0 : i32
    %c0_i32_0 = arith.constant 0 : i32
    %c0_i32_1 = arith.constant 0 : i32
    %c0_i32_2 = arith.constant 0 : i32
    return %c0_i32, %c0_i32_0, %c0_i32_1 : i32, i32, i32
  }
  func.func @transform_5(%arg0: i32) -> (i32, i32, i32) {
    %c0_i32 = arith.constant 0 : i32
    %c0_i32_0 = arith.constant 0 : i32
    %c0_i32_1 = arith.constant 0 : i32
    %c0_i32_2 = arith.constant 0 : i32
    return %c0_i32, %c0_i32_0, %c0_i32_1 : i32, i32, i32
  }
  func.func @transform_6(%arg0: i32) -> (i32, i32, i32) {
    %c0_i32 = arith.constant 0 : i32
    %c0_i32_0 = arith.constant 0 : i32
    %c0_i32_1 = arith.constant 0 : i32
    %c0_i32_2 = arith.constant 0 : i32
    return %c0_i32, %c0_i32_0, %c0_i32_1 : i32, i32, i32
  }
  func.func @transform_7(%arg0: i32) -> (i32, i32, i32) {
    %c0_i32 = arith.constant 0 : i32
    %c0_i32_0 = arith.constant 0 : i32
    %c0_i32_1 = arith.constant 0 : i32
    %c0_i32_2 = arith.constant 0 : i32
    return %c0_i32, %c0_i32_0, %c0_i32_1 : i32, i32, i32
  }
  func.func @transform_8(%arg0: i32) -> (i32, i32, i32) {
    %c0_i32 = arith.constant 0 : i32
    %c0_i32_0 = arith.constant 0 : i32
    %c0_i32_1 = arith.constant 0 : i32
    %c0_i32_2 = arith.constant 0 : i32
    return %c0_i32, %c0_i32_0, %c0_i32_1 : i32, i32, i32
  }
  func.func @transform_9(%arg0: i32) -> (i32, i32, i32) {
    %c0_i32 = arith.constant 0 : i32
    %c0_i32_0 = arith.constant 0 : i32
    %c0_i32_1 = arith.constant 0 : i32
    %c0_i32_2 = arith.constant 0 : i32
    return %c0_i32, %c0_i32_0, %c0_i32_1 : i32, i32, i32
  }
  func.func @transform_10(%arg0: i32) -> (i32, i32) {
    %c0_i32 = arith.constant 0 : i32
    %c0_i32_0 = arith.constant 0 : i32
    %c0_i32_1 = arith.constant 0 : i32
    return %c0_i32, %c0_i32_0 : i32, i32
  }
  func.func @transform_11(%arg0: i32) -> (i32, i32) {
    %c0_i32 = arith.constant 0 : i32
    %c0_i32_0 = arith.constant 0 : i32
    %c0_i32_1 = arith.constant 0 : i32
    return %c0_i32, %c0_i32_0 : i32, i32
  }
  func.func @transform_12(%arg0: i32) -> (i32, i32, i32) {
    %c0_i32 = arith.constant 0 : i32
    %c0_i32_0 = arith.constant 0 : i32
    %c0_i32_1 = arith.constant 0 : i32
    return %arg0, %c0_i32, %c0_i32_0 : i32, i32, i32
  }
}

</mosaic_0001>

<bundles_post_ra>
// kernel: tpu_custom_call.1
= control target key start
LH: loop header
LB: loop body
LE: loop exit
PB: predicated region body
PF: predicated region fallthrough
CT: control target
= control target key end

     0   :  { %17 = vsyncpa [#allocation3], 0  ;;  %s5287_s0 = inlined_call_operand.hbm [shape: f32[2,8,32], index: 0, kind: input, shape index: {}]   ;;  %s5288_s1 = inlined_call_operand.vmem [shape: f32[2,1,8], index: 1, kind: input, shape index: {}]   ;;  %s5289_s2 = inlined_call_operand.vmem [shape: f32[2,32,96], index: 2, kind: input, shape index: {}]   ;;  %s5290_s3 = inlined_call_operand.hbm [shape: f32[2,1,96], index: 3, kind: input, shape index: {}]   ;;  %s5291_s4 = inlined_call_operand.vmem [shape: f32[2,32,32], index: 4, kind: input, shape index: {}]   ;;  %s5292_s5 = inlined_call_operand.hbm [shape: f32[2,1,32], index: 5, kind: input, shape index: {}]   ;;  %s5293_s6 = inlined_call_operand.vmem [shape: f32[2,32,64], index: 6, kind: input, shape index: {}]   ;;  %s5294_s7 = inlined_call_operand.vmem [shape: f32[2,1,64], index: 7, kind: input, shape index: {}]   ;;  %s5295_s8 = inlined_call_operand.vmem [shape: f32[2,64,32], index: 8, kind: input, shape index: {}]   ;;  %s5296_s9 = inlined_call_operand.vmem [shape: f32[2,1,32], index: 9, kind: input, shape index: {}]   ;;  %s5297_s10 = inlined_call_operand.vmem [shape: f32[5,32], index: 10, kind: input, shape index: {}]   ;;  %s5298_s11 = inlined_call_operand.vmem [shape: f32[5,32], index: 11, kind: input, shape index: {}]   ;;  %s5299_s12 = inlined_call_operand.hbm [shape: f32[2,8,32], index: 12, kind: output, shape index: {}]  }
   0x1   :  { %18 = vsyncpa [#allocation6], 0 }
   0x2   :  { %19 = vsyncpa [#allocation4], 0  ;;  %s4541_s21 = smov [#allocation5]   ;;  %s4447_s25 = scalar_lea.hbm %s5290_s3, 32 }
   0x3   :  { %s41_s22 = sshll.u32 %s4541_s21, 4  ;;  %p4448_p0 = scmp.ne.s32.totalorder %s5290_s3, %s4447_s25  ;;  %s42_s22 = int_to_ptr.vmem [resolvable:$true] %s41_s22 }
   0x4   :  { %p4451_p1 = scmp.lt.u32.totalorder %s4447_s25, %s5290_s3 }
   0x6   :  { %p4453_p2 = pnand %p4451_p1, %p4448_p0 }
   0x8   :  { %4456 = shalt.err (!%p4453_p2)
}
   0x9   :  { %s4457_s30 = scalar_lea.vmem %s42_s22, 32  ;;  %p4462_p4 = scmp.lt.s32.totalorder %s42_s22, %s42_s22 }
   0xa   :  { %p4458_p3 = scmp.ne.s32.totalorder %s42_s22, %s4457_s30  ;;  %p4463_p5 = scmp.lt.s32.totalorder %s4457_s30, %s4457_s30 }
   0xc   :  { %p4464_p6 = por %p4463_p5, %p4462_p4 }
   0xe   :  { %p4465_p7 = pnand %p4464_p6, %p4458_p3 }
  0x10   :  { %4468 = shalt.err (!%p4465_p7)
}
  0x11   :  { %s5303_s13 = smov 16   ;;  %s4543_s14 = smov 1  }
  0x12   :  { %47 = dma.hbm_to_vmem [thread:$0]  %s5290_s3, 32, %s42_s22, [#allocation6], %s5303_s13, %s5303_s13, %s4543_s14  }
  0x13   :  { %s4544_s17 = smov [#allocation2]   ;;  %s4469_s21 = scalar_lea.hbm %s5287_s0, 256 }
  0x14   :  { %s25_s18 = sshll.u32 %s4544_s17, 4  ;;  %p4470_p8 = scmp.ne.s32.totalorder %s5287_s0, %s4469_s21  ;;  %s26_s18 = int_to_ptr.vmem [resolvable:$true] %s25_s18 }
  0x15   :  { %p4473_p9 = scmp.lt.u32.totalorder %s4469_s21, %s5287_s0 }
  0x17   :  { %p4475_p10 = pnand %p4473_p9, %p4470_p8 }
  0x19   :  { %4478 = shalt.err (!%p4475_p10)
}
  0x1a   :  { %s4479_s27 = scalar_lea.vmem %s26_s18, 256  ;;  %p4484_p12 = scmp.lt.s32.totalorder %s26_s18, %s26_s18 }
  0x1b   :  { %p4480_p11 = scmp.ne.s32.totalorder %s26_s18, %s4479_s27  ;;  %p4485_p13 = scmp.lt.s32.totalorder %s4479_s27, %s4479_s27 }
  0x1d   :  { %p4486_p0 = por %p4485_p13, %p4484_p12 }
  0x1f   :  { %p4487_p1 = pnand %p4486_p0, %p4480_p11 }
  0x21   :  { %4490 = shalt.err (!%p4487_p1)
}
  0x22   :  { %s5300_s3 = smov 128   ;;  %s5305_s22 = smov 8  }
  0x23   :  { %31 = dma.hbm_to_vmem [thread:$0]  %s5287_s0, 256, %s26_s18, [#allocation3], %s5300_s3, %s5300_s3, %s5305_s22  }
  0x24   :  { %s4547_s30 = smov [#allocation7]   ;;  %s4491_s19 = scalar_lea.hbm %s5292_s5, 32 }
  0x25   :  { %s55_s15 = sshll.u32 %s4547_s30, 4  ;;  %p4492_p2 = scmp.ne.s32.totalorder %s5292_s5, %s4491_s19  ;;  %s56_s15 = int_to_ptr.vmem [resolvable:$true] %s55_s15 }
  0x26   :  { %p4495_p3 = scmp.lt.u32.totalorder %s4491_s19, %s5292_s5 }
  0x28   :  { %p4497_p4 = pnand %p4495_p3, %p4492_p2 }
  0x2a   :  { %4500 = shalt.err (!%p4497_p4)
}
  0x2b   :  { %s4501_s25 = scalar_lea.vmem %s56_s15, 32  ;;  %p4506_p6 = scmp.lt.s32.totalorder %s56_s15, %s56_s15 }
  0x2c   :  { %p4502_p5 = scmp.ne.s32.totalorder %s56_s15, %s4501_s25  ;;  %p4507_p7 = scmp.lt.s32.totalorder %s4501_s25, %s4501_s25 }
  0x2e   :  { %p4508_p8 = por %p4507_p7, %p4506_p6 }
  0x30   :  { %p4509_p9 = pnand %p4508_p8, %p4502_p5 }
  0x32   :  { %4512 = shalt.err (!%p4509_p9)
}
  0x33   :  { %61 = dma.hbm_to_vmem [thread:$0]  %s5292_s5, 32, %s56_s15, [#allocation6], %s5303_s13, %s5303_s13, %s4543_s14  }
  0x34   :  { %4535 = dma.done.wait [#allocation3], 256  }
  0x35   :  { %4536 = vsyncadd [#allocation3], 4294967040 }
  0x36   :  { %4537 = dma.done.wait [#allocation6], 64  }
  0x37   :  { %4538 = vsyncadd [#allocation6], 4294967232  ;;  %vm89_vm0 = vcmask 261120   ;;  %v4673_v0 = vld [vmem:[#allocation2] sm:$0xff]  ;;  %v4675_v1 = vld [vmem:[#allocation2 + $0x8] sm:$0xff]  ;;  %v117_v22 = vlaneseq  ;;  %v4548_v41 = vmov 0.0  }
  0x38   :  { %v90_v2 = vsel %vm89_vm0, %v4673_v0, 0.0  ;;  %v93_v3 = vsel %vm89_vm0, %v4675_v1, 0.0  ;;  %v129_v14 = vld [vmem:[%s5289_s2] sm:$0xff]  ;;  %v130_v15 = vld [vmem:[%s5289_s2 + $0x8] sm:$0xff]  ;;  %v131_v16 = vld [vmem:[%s5289_s2 + $0x10] sm:$0xff]  ;;  %4014 = vmatprep.subr.mxu0 %v4548_v41  ;;  %vm4549_vm1 = vmmov 0  }
  0x39   :  { %91 = vadd.xlane.f32.xlu0 %v90_v2  ;;  %v4257_v17 = vpack.c.bf16 %v130_v15, %v129_v14  ;;  %v132_v18 = vld [vmem:[%s5289_s2 + $0x18] sm:$0xff]  ;;  %v4697_v26 = vshrl.u32 %v117_v22, 7  ;;  %v4703_v29 = vld [vmem:[%s5297_s10] sm:$0x1f]  ;;  %4016 = vmatprep.mubr.msk.f32.mxu0 %vm4549_vm1, %v4548_v41  ;;  %v3777_v42 = vld [vmem:[#allocation5] ss:$0 sm:$0xff] }
  0x3a   :  { %v4261_v19 = vpack.c.bf16 %v132_v18, %v131_v16  ;;  %v4708_v30 = vld [vmem:[%s5298_s11] sm:$0x1f]  ;;  %s4550_s21 = smov 96   ;;  %vm236_vm2 = vcmask 64512   ;;  %s4551_s18 = smov 64   ;;  %vm1581_vm3 = vcmask 195584  }
  0x3b   :  { %4258 = vmatprep.subr.bf16.mxu1 %v4257_v17  ;;  %v119_v28 = vsub.s32 0, %v4697_v26  ;;  %v4743_v49 = vld [vmem:[%s5288_s1] ss:$0 sm:$0xff]  ;;  %v4749_v53 = vld [vmem:[%s5288_s1 + $0x1] ss:$0 sm:$0xff]  ;;  %s4552_s5 = smov 88  }
  0x3c   :  { %4260 = vmatpush3.bf16.msra.mxu1 %v4257_v17  ;;  %s4553_s14 = smov 120   ;;  %s4554_s26 = smov 56   ;;  %vm1578_vm4 = vcmask 130048   ;;  %vm1825_vm5 = vcmask 523264  }
  0x3d   :  { %94 = vadd.xlane.f32.xlu0 %v93_v3  ;;  %4262 = vmatprep.subr.bf16.mxu1 %v4261_v19  ;;  %v120_v31 = vrot.slane %v4703_v29, %v119_v28  ;;  %v126_v34 = vrot.slane %v4708_v30, %v119_v28  ;;  %s4555_s27 = smov 80   ;;  %s4556_s28 = smov 112  }
  0x3e   :  { %s4557_s29 = smov 48   ;;  %s4558_s30 = smov 72  }
  0x3f   :  { %s4559_s15 = smov 104   ;;  %s4560_s16 = smov 40  }
  0x40   :  { %4264 = vmatpush3.bf16.msra.mxu1 %v4261_v19  ;;  %s5301_s17 = smov 24   ;;  %s5309_s0 = smov 24  }
  0x41   :  { %4004 = vmatprep.subr.mxu1 %v4548_v41 }
  0xc6   :  { %v92_v4 = vpop.xlane.xlu0 %91 }
  0xc7   :  { %v97_v5 = vmul.f32 0.03125, %v92_v4 }
  0xc9   :  { %v99_v6 = vsub.f32 %v4673_v0, %v97_v5 }
  0xca   :  { %v95_v7 = vpop.xlane.xlu0 %94 }
  0xcb   :  { %v98_v8 = vmul.f32 0.03125, %v95_v7  ;;  %v101_v9 = vmul.f32 %v99_v6, %v99_v6 }
  0xcd   :  { %v100_v10 = vsub.f32 %v4675_v1, %v98_v8  ;;  %v103_v11 = vsel %vm89_vm0, %v101_v9, 0.0 }
  0xce   :  { %104 = vadd.xlane.f32.xlu1 %v103_v11 }
  0xcf   :  { %v102_v12 = vmul.f32 %v100_v10, %v100_v10 }
  0xd1   :  { %v106_v13 = vsel %vm89_vm0, %v102_v12, 0.0 }
  0xd2   :  { %107 = vadd.xlane.f32.xlu1 %v106_v13 }
 0x15b   :  { %v105_v20 = vpop.xlane.xlu1 %104 }
 0x15c   :  { %v109_v21 = vmul.f32 0.03125, %v105_v20 }
 0x15e   :  { %v111_v23 = vadd.f32 1e-06, %v109_v21 }
 0x15f   :  { %v108_v24 = vpop.xlane.xlu1 %107 }
 0x160   :  { %4359 = vrsqrt.f32 %v111_v23  ;;  %v110_v25 = vmul.f32 0.03125, %v108_v24 }
 0x162   :  { %v112_v27 = vadd.f32 1e-06, %v110_v25 }
 0x164   :  { %4361 = vrsqrt.f32 %v112_v27 }
 0x16a   :  { %v4360_v32 = vpop.eup %4359 }
 0x16b   :  { %v115_v33 = vmul.f32 %v4360_v32, %v99_v6 }
 0x16d   :  { %v121_v35 = vmul.f32 %v120_v31, %v115_v33 }
 0x16e   :  { %v4362_v36 = vpop.eup %4361 }
 0x16f   :  { %v116_v37 = vmul.f32 %v4362_v36, %v100_v10  ;;  %v127_v38 = vadd.f32 %v126_v34, %v121_v35 }
 0x171   :  { %v122_v39 = vmul.f32 %v120_v31, %v116_v37  ;;  %4001 = vmatprep.mubr.msk.f32.mxu1 %vm89_vm0, %v127_v38 }
 0x173   :  { %v128_v40 = vadd.f32 %v126_v34, %v122_v39 }
 0x175   :  { %4002 = vmatmul.mubr.msk.f32.vlgmr.msra.gmra.mrb[0].mxu1 %vm89_vm0, %v128_v40 }
 0x176   :  { %4006 = vmatprep.mubr.msk.f32.mxu1 %vm4549_vm1, %v4548_v41 }
 0x248   :  { %v4003_v43 = vpop.f32.mrb[0].mxu1 }
 0x249   :  { %v4720_v44 = vadd.f32 %v4003_v43, %v3777_v42  ;;  %v212_v45 = vpop.f32.mrb[1].mxu1 }
 0x24a   :  { %v4722_v46 = vadd.f32 %v3777_v42, %v212_v45 }
 0x24b   :  { %312 = vrot.lane.b32.xlu1 %v4720_v44, %s4550_s21 }
 0x24c   :  { %234 = vrot.lane.b32.xlu0 %v4722_v46, %s4550_s21 }
 0x2bd   :  { %v313_v48 = vpop.permute.xlu1 %312 }
 0x2be   :  { %v235_v47 = vpop.permute.xlu0 %234 }
 0x2bf   :  { %4005 = vmatpush3.xpose.msk.msra.mxu1 %vm236_vm2, %v235_v47 }
 0x2c0   :  { %4009 = vmatprep.subr.mxu1 %v4548_v41 }
 0x2c2   :  { %4007 = vmatmul.mubr.msk.f32.vlgmr.msra.gmra.mrb[2].mxu1 %vm236_vm2, %v4722_v46 }
 0x2c3   :  { %4010 = vmatpush3.xpose.msk.msra.mxu1 %vm236_vm2, %v313_v48  ;;  %4011 = vmatprep.mubr.msk.f32.mxu1 %vm4549_vm1, %v4548_v41 }
 0x2c4   :  { %4019 = vmatprep.subr.mxu1 %v4548_v41 }
 0x2c6   :  { %4012 = vmatmul.mubr.msk.f32.vlgmr.msra.gmra.mrb[4].mxu1 %vm236_vm2, %v4720_v44 }
 0x2c7   :  { %4021 = vmatprep.mubr.msk.f32.mxu1 %vm4549_vm1, %v4548_v41 }
 0x395   :  { %v307_v50 = vpop.f32.mrb[2].mxu1 }
 0x396   :  { %v308_v51 = vadd.f32 %v4743_v49, %v307_v50  ;;  %v4008_v52 = vpop.f32.mrb[3].mxu1 }
 0x398   :  { %v388_v54 = vsel %vm236_vm2, %v308_v51, -inf }
 0x399   :  { %389 = vmax.xlane.f32.xlu1 %v388_v54  ;;  %v384_v55 = vpop.f32.mrb[4].mxu1 }
 0x39a   :  { %v385_v56 = vadd.f32 %v4749_v53, %v384_v55  ;;  %v4013_v57 = vpop.f32.mrb[5].mxu1 }
 0x39c   :  { %v391_v58 = vsel %vm236_vm2, %v385_v56, -inf }
 0x39d   :  { %392 = vmax.xlane.f32.xlu0 %v391_v58 }
 0x3aa   :  { %486 = vrot.lane.b32.xlu1 %v4720_v44, %s4551_s18 }
 0x3ae   :  { %564 = vrot.lane.b32.xlu1 %v4722_v46, %s4552_s5 }
 0x3b2   :  { %642 = vrot.lane.b32.xlu1 %v4720_v44, %s4552_s5 }
 0x3b3   :  { %410 = vrot.lane.b32.xlu0 %v4722_v46, %s4551_s18 }
 0x426   :  { %v390_v59 = vpop.xlane.xlu1 %389 }
 0x427   :  { %v394_v60 = vsub.f32 %v308_v51, %v390_v59 }
 0x429   :  { %v396_v61 = vmul.f32 1.442695, %v394_v60 }
 0x42a   :  { %v487_v62 = vpop.permute.xlu1 %486  ;;  %v393_v63 = vpop.xlane.xlu0 %392 }
 0x42b   :  { %4363 = vpow2.f32 %v396_v61  ;;  %v395_v2 = vsub.f32 %v385_v56, %v393_v63  ;;  %4020 = vmatpush3.msra.mxu1 %v487_v62 }
 0x42c   :  { %4029 = vmatprep.subr.mxu1 %v4548_v41 }
 0x42d   :  { %v398_v3 = vmul.f32 1.442695, %v395_v2 }
 0x42e   :  { %v411_v4 = vpop.permute.xlu0 %410  ;;  %v565_v9 = vpop.permute.xlu1 %564 }
 0x42f   :  { %4365 = vpow2.f32 %v398_v3  ;;  %4015 = vmatpush3.msra.mxu0 %v411_v4 }
 0x430   :  { %4024 = vmatprep.subr.mxu0 %v4548_v41 }
 0x432   :  { %v643_v10 = vpop.permute.xlu1 %642 }
 0x435   :  { %v4364_v5 = vpop.eup %4363 }
 0x436   :  { %v400_v6 = vsel %vm236_vm2, %v4364_v5, 0.0 }
 0x437   :  { %401 = vadd.xlane.f32.xlu0 %v400_v6 }
 0x439   :  { %v4366_v7 = vpop.eup %4365 }
 0x43a   :  { %v403_v8 = vsel %vm236_vm2, %v4366_v7, 0.0 }
 0x43b   :  { %404 = vadd.xlane.f32.xlu1 %v403_v8 }
 0x44c   :  { %640 = vrot.lane.b32.xlu1 %v4720_v44, %s4553_s14 }
 0x44d   :  { %562 = vrot.lane.b32.xlu0 %v4722_v46, %s4553_s14 }
 0x4c4   :  { %v402_v11 = vpop.xlane.xlu0 %401 }
 0x4c5   :  { %4367 = vrcp.f32 %v402_v11 }
 0x4c8   :  { %v405_v12 = vpop.xlane.xlu1 %404  ;;  %v563_v17 = vpop.permute.xlu0 %562 }
 0x4c9   :  { %4369 = vrcp.f32 %v405_v12 }
 0x4cc   :  { %v641_v18 = vpop.permute.xlu1 %640 }
 0x4cf   :  { %v4368_v13 = vpop.eup %4367 }
 0x4d0   :  { %v408_v14 = vmul.f32 %v4368_v13, %v4364_v5 }
 0x4d2   :  { %4017 = vmatmul.mubr.msk.f32.vlgmr.msra.gmra.mrb[0].mxu0 %vm236_vm2, %v408_v14 }
 0x4d3   :  { %v4370_v15 = vpop.eup %4369  ;;  %4025 = vmatpush3.xpose.msk.msra.mxu0 %vm236_vm2, %v565_v9  ;;  %4026 = vmatprep.mubr.msk.f32.mxu0 %vm4549_vm1, %v4548_v41 }
 0x4d4   :  { %v409_v16 = vmul.f32 %v4370_v15, %v4366_v7  ;;  %4034 = vmatprep.subr.mxu0 %v4548_v41 }
 0x4d6   :  { %4022 = vmatmul.mubr.msk.f32.vlgmr.msra.gmra.mrb[6].mxu1 %vm236_vm2, %v409_v16  ;;  %4027 = vmatmul.mubr.msk.f32.vlgmr.msra.gmra.mrb[2].mxu0 %vm236_vm2, %v563_v17 }
 0x4d7   :  { %4030 = vmatpush3.xpose.msk.msra.mxu1 %vm236_vm2, %v643_v10  ;;  %4031 = vmatprep.mubr.msk.f32.mxu1 %vm4549_vm1, %v4548_v41 }
 0x4d8   :  { %4039 = vmatprep.subr.mxu1 %v4548_v41  ;;  %4036 = vmatprep.mubr.msk.f32.mxu0 %vm4549_vm1, %v4548_v41 }
 0x4da   :  { %4032 = vmatmul.mubr.msk.f32.vlgmr.msra.gmra.mrb[8].mxu1 %vm236_vm2, %v641_v18 }
 0x4db   :  { %4041 = vmatprep.mubr.msk.f32.mxu1 %vm4549_vm1, %v4548_v41 }
 0x5a5   :  { %v4786_v19 = vpop.f32.mrb[0].mxu0 }
 0x5a6   :  { %v4018_v20 = vpop.f32.mrb[1].mxu0 }
 0x5a9   :  { %v4788_v21 = vpop.f32.mrb[6].mxu1  ;;  %v636_v22 = vpop.f32.mrb[2].mxu0 }
 0x5aa   :  { %v637_v23 = vadd.f32 %v4743_v49, %v636_v22  ;;  %v4023_v24 = vpop.f32.mrb[7].mxu1  ;;  %v4028_v25 = vpop.f32.mrb[3].mxu0 }
 0x5ac   :  { %v718_v27 = vsel %vm236_vm2, %v637_v23, -inf }
 0x5ad   :  { %719 = vmax.xlane.f32.xlu0 %v718_v27  ;;  %v714_v28 = vpop.f32.mrb[8].mxu1 }
 0x5ae   :  { %v715_v31 = vadd.f32 %v4749_v53, %v714_v28  ;;  %v4033_v32 = vpop.f32.mrb[9].mxu1 }
 0x5b0   :  { %v721_v33 = vsel %vm236_vm2, %v715_v31, -inf }
 0x5b1   :  { %722 = vmax.xlane.f32.xlu1 %v721_v33 }
 0x5c2   :  { %816 = vrot.lane.b32.xlu1 %v4720_v44, %s4554_s26 }
 0x5c3   :  { %740 = vrot.lane.b32.xlu0 %v4722_v46, %s4554_s26 }
 0x5c6   :  { %894 = vrot.lane.b32.xlu1 %v4722_v46, %s4555_s27 }
 0x5ca   :  { %972 = vrot.lane.b32.xlu1 %v4720_v44, %s4555_s27 }
 0x5ce   :  { %970 = vrot.lane.b32.xlu1 %v4720_v44, %s4556_s28 }
 0x63a   :  { %v720_v34 = vpop.xlane.xlu0 %719 }
 0x63b   :  { %v724_v35 = vsub.f32 %v637_v23, %v720_v34 }
 0x63d   :  { %v726_v36 = vmul.f32 1.442695, %v724_v35 }
 0x63e   :  { %v741_v37 = vpop.permute.xlu0 %740  ;;  %v723_v38 = vpop.xlane.xlu1 %722 }
 0x63f   :  { %4371 = vpow2.f32 %v726_v36  ;;  %v725_v39 = vsub.f32 %v715_v31, %v723_v38  ;;  %4035 = vmatpush3.msra.mxu0 %v741_v37 }
 0x640   :  { %4044 = vmatprep.subr.mxu0 %v4548_v41 }
 0x641   :  { %v728_v40 = vmul.f32 1.442695, %v725_v39 }
 0x642   :  { %v817_v42 = vpop.permute.xlu1 %816 }
 0x643   :  { %4373 = vpow2.f32 %v728_v40  ;;  %4040 = vmatpush3.msra.mxu1 %v817_v42 }
 0x644   :  { %4049 = vmatprep.subr.mxu1 %v4548_v41 }
 0x646   :  { %v895_v52 = vpop.permute.xlu1 %894 }
 0x649   :  { %v4372_v43 = vpop.eup %4371 }
 0x64a   :  { %v730_v45 = vsel %vm236_vm2, %v4372_v43, 0.0  ;;  %v973_v57 = vpop.permute.xlu1 %972 }
 0x64b   :  { %731 = vadd.xlane.f32.xlu0 %v730_v45 }
 0x64d   :  { %v4374_v47 = vpop.eup %4373 }
 0x64e   :  { %v733_v48 = vsel %vm236_vm2, %v4374_v47, 0.0  ;;  %v971_v60 = vpop.permute.xlu1 %970 }
 0x64f   :  { %734 = vadd.xlane.f32.xlu0 %v733_v48 }
 0x665   :  { %892 = vrot.lane.b32.xlu0 %v4722_v46, %s4556_s28 }
 0x6d8   :  { %v732_v50 = vpop.xlane.xlu0 %731 }
 0x6d9   :  { %4375 = vrcp.f32 %v732_v50 }
 0x6dc   :  { %v735_v51 = vpop.xlane.xlu0 %734 }
 0x6dd   :  { %4377 = vrcp.f32 %v735_v51 }
 0x6e0   :  { %v893_v59 = vpop.permute.xlu0 %892 }
 0x6e3   :  { %v4376_v54 = vpop.eup %4375 }
 0x6e4   :  { %v738_v55 = vmul.f32 %v4376_v54, %v4372_v43 }
 0x6e6   :  { %4037 = vmatmul.mubr.msk.f32.vlgmr.msra.gmra.mrb[4].mxu0 %vm236_vm2, %v738_v55 }
 0x6e7   :  { %v4378_v56 = vpop.eup %4377  ;;  %4045 = vmatpush3.xpose.msk.msra.mxu0 %vm236_vm2, %v895_v52  ;;  %4046 = vmatprep.mubr.msk.f32.mxu0 %vm4549_vm1, %v4548_v41 }
 0x6e8   :  { %v739_v58 = vmul.f32 %v4378_v56, %v4374_v47  ;;  %4054 = vmatprep.subr.mxu0 %v4548_v41 }
 0x6ea   :  { %4042 = vmatmul.mubr.msk.f32.vlgmr.msra.gmra.mrb[10].mxu1 %vm236_vm2, %v739_v58  ;;  %4047 = vmatmul.mubr.msk.f32.vlgmr.msra.gmra.mrb[6].mxu0 %vm236_vm2, %v893_v59 }
 0x6eb   :  { %4050 = vmatpush3.xpose.msk.msra.mxu1 %vm236_vm2, %v973_v57  ;;  %4051 = vmatprep.mubr.msk.f32.mxu1 %vm4549_vm1, %v4548_v41 }
 0x6ec   :  { %4059 = vmatprep.subr.mxu1 %v4548_v41  ;;  %4056 = vmatprep.mubr.msk.f32.mxu0 %vm4549_vm1, %v4548_v41 }
 0x6ee   :  { %4052 = vmatmul.mubr.msk.f32.vlgmr.msra.gmra.mrb[12].mxu1 %vm236_vm2, %v971_v60 }
 0x6ef   :  { %4061 = vmatprep.mubr.msk.f32.mxu1 %vm4549_vm1, %v4548_v41 }
 0x7b9   :  { %v4826_v61 = vpop.f32.mrb[4].mxu0 }
 0x7ba   :  { %v4038_v62 = vpop.f32.mrb[5].mxu0 }
 0x7bd   :  { %v4828_v63 = vpop.f32.mrb[10].mxu1  ;;  %v966_v2 = vpop.f32.mrb[6].mxu0 }
 0x7be   :  { %v967_v3 = vadd.f32 %v4743_v49, %v966_v2  ;;  %v4043_v4 = vpop.f32.mrb[11].mxu1  ;;  %v4048_v5 = vpop.f32.mrb[7].mxu0 }
 0x7c0   :  { %v1048_v6 = vsel %vm236_vm2, %v967_v3, -inf }
 0x7c1   :  { %1049 = vmax.xlane.f32.xlu0 %v1048_v6  ;;  %v1044_v7 = vpop.f32.mrb[12].mxu1 }
 0x7c2   :  { %v1045_v8 = vadd.f32 %v4749_v53, %v1044_v7  ;;  %v4053_v9 = vpop.f32.mrb[13].mxu1 }
 0x7c4   :  { %v1051_v10 = vsel %vm236_vm2, %v1045_v8, -inf }
 0x7c5   :  { %1052 = vmax.xlane.f32.xlu1 %v1051_v10  ;;  %v1585_v10 = vld [vmem:[%s5291_s4 + $0x8] sm:$0xff] }
 0x7d6   :  { %1146 = vrot.lane.b32.xlu1 %v4720_v44, %s4557_s29 }
 0x7d7   :  { %1070 = vrot.lane.b32.xlu0 %v4722_v46, %s4557_s29 }
 0x7da   :  { %1224 = vrot.lane.b32.xlu1 %v4722_v46, %s4558_s30 }
 0x7de   :  { %1302 = vrot.lane.b32.xlu1 %v4720_v44, %s4558_s30 }
 0x7e2   :  { %1300 = vrot.lane.b32.xlu1 %v4720_v44, %s4559_s15 }
 0x84e   :  { %v1050_v11 = vpop.xlane.xlu0 %1049 }
 0x84f   :  { %v1054_v12 = vsub.f32 %v967_v3, %v1050_v11 }
 0x851   :  { %v1056_v13 = vmul.f32 1.442695, %v1054_v12  ;;  %v1586_v12 = vld [vmem:[%s5291_s4 + $0x10] sm:$0xff] }
 0x852   :  { %v1071_v14 = vpop.permute.xlu0 %1070  ;;  %v1053_v15 = vpop.xlane.xlu1 %1052 }
 0x853   :  { %4379 = vpow2.f32 %v1056_v13  ;;  %v1055_v16 = vsub.f32 %v1045_v8, %v1053_v15  ;;  %4055 = vmatpush3.msra.mxu0 %v1071_v14  ;;  %v1587_v13 = vld [vmem:[%s5291_s4 + $0x18] sm:$0xff] }
 0x854   :  { %4064 = vmatprep.subr.mxu0 %v4548_v41  ;;  %v4269_v14 = vpack.c.bf16 %v1587_v13, %v1586_v12  ;;  %v1706_v13 = vsub.s32 1, %v4697_v26 }
 0x855   :  { %v1058_v17 = vmul.f32 1.442695, %v1055_v16 }
 0x856   :  { %v1147_v18 = vpop.permute.xlu1 %1146 }
 0x857   :  { %4381 = vpow2.f32 %v1058_v17  ;;  %4060 = vmatpush3.msra.mxu1 %v1147_v18 }
 0x858   :  { %4069 = vmatprep.subr.mxu1 %v4548_v41 }
 0x85a   :  { %v1225_v28 = vpop.permute.xlu1 %1224 }
 0x85d   :  { %v4380_v20 = vpop.eup %4379 }
 0x85e   :  { %v1060_v22 = vsel %vm236_vm2, %v4380_v20, 0.0  ;;  %v1303_v34 = vpop.permute.xlu1 %1302 }
 0x85f   :  { %1061 = vadd.xlane.f32.xlu0 %v1060_v22 }
 0x861   :  { %v4382_v23 = vpop.eup %4381 }
 0x862   :  { %v1063_v24 = vsel %vm236_vm2, %v4382_v23, 0.0  ;;  %v1301_v37 = vpop.permute.xlu1 %1300 }
 0x863   :  { %1064 = vadd.xlane.f32.xlu0 %v1063_v24 }
 0x879   :  { %1222 = vrot.lane.b32.xlu0 %v4722_v46, %s4559_s15 }
 0x8ec   :  { %v1062_v25 = vpop.xlane.xlu0 %1061 }
 0x8ed   :  { %4383 = vrcp.f32 %v1062_v25 }
 0x8f0   :  { %v1065_v27 = vpop.xlane.xlu0 %1064 }
 0x8f1   :  { %4385 = vrcp.f32 %v1065_v27 }
 0x8f4   :  { %v1223_v36 = vpop.permute.xlu0 %1222 }
 0x8f7   :  { %v4384_v31 = vpop.eup %4383 }
 0x8f8   :  { %v1068_v32 = vmul.f32 %v4384_v31, %v4380_v20 }
 0x8fa   :  { %4057 = vmatmul.mubr.msk.f32.vlgmr.msra.gmra.mrb[8].mxu0 %vm236_vm2, %v1068_v32 }
 0x8fb   :  { %v4386_v33 = vpop.eup %4385  ;;  %4065 = vmatpush3.xpose.msk.msra.mxu0 %vm236_vm2, %v1225_v28  ;;  %4066 = vmatprep.mubr.msk.f32.mxu0 %vm4549_vm1, %v4548_v41 }
 0x8fc   :  { %v1069_v35 = vmul.f32 %v4386_v33, %v4382_v23  ;;  %4074 = vmatprep.subr.mxu0 %v4548_v41 }
 0x8fe   :  { %4062 = vmatmul.mubr.msk.f32.vlgmr.msra.gmra.mrb[14].mxu1 %vm236_vm2, %v1069_v35  ;;  %4067 = vmatmul.mubr.msk.f32.vlgmr.msra.gmra.mrb[10].mxu0 %vm236_vm2, %v1223_v36 }
 0x8ff   :  { %4070 = vmatpush3.xpose.msk.msra.mxu1 %vm236_vm2, %v1303_v34  ;;  %4071 = vmatprep.mubr.msk.f32.mxu1 %vm4549_vm1, %v4548_v41 }
 0x900   :  { %4079 = vmatprep.subr.mxu1 %v4548_v41  ;;  %4076 = vmatprep.mubr.msk.f32.mxu0 %vm4549_vm1, %v4548_v41 }
 0x902   :  { %4072 = vmatmul.mubr.msk.f32.vlgmr.msra.gmra.mrb[16].mxu1 %vm236_vm2, %v1301_v37 }
 0x903   :  { %4081 = vmatprep.mubr.msk.f32.mxu1 %vm4549_vm1, %v4548_v41 }
 0x9cd   :  { %v1142_v38 = vpop.f32.mrb[8].mxu0 }
 0x9ce   :  { %v4058_v39 = vpop.f32.mrb[9].mxu0 }
 0x9d1   :  { %v1218_v40 = vpop.f32.mrb[14].mxu1  ;;  %v1296_v42 = vpop.f32.mrb[10].mxu0 }
 0x9d2   :  { %v1297_v43 = vadd.f32 %v4743_v49, %v1296_v42  ;;  %v4063_v45 = vpop.f32.mrb[15].mxu1  ;;  %v4068_v47 = vpop.f32.mrb[11].mxu0 }
 0x9d4   :  { %v1378_v48 = vsel %vm236_vm2, %v1297_v43, -inf }
 0x9d5   :  { %1379 = vmax.xlane.f32.xlu0 %v1378_v48  ;;  %v1374_v50 = vpop.f32.mrb[16].mxu1 }
 0x9d6   :  { %v1375_v51 = vadd.f32 %v4749_v53, %v1374_v50  ;;  %v4073_v52 = vpop.f32.mrb[17].mxu1 }
 0x9d8   :  { %v1381_v54 = vsel %vm236_vm2, %v1375_v51, -inf }
 0x9d9   :  { %1382 = vmax.xlane.f32.xlu1 %v1381_v54 }
 0x9ea   :  { %1476 = vrot.lane.b32.xlu1 %v4720_v44, %s4560_s16 }
 0x9ee   :  { %1554 = vrot.lane.b32.xlu1 %v4826_v61, %s5305_s22 }
 0x9f2   :  { %1556 = vrot.lane.b32.xlu1 %v4828_v63, %s5305_s22 }
 0x9f6   :  { %1564 = vrot.lane.b32.xlu1 %v1218_v40, %s5303_s13 }
 0xa62   :  { %v1380_v55 = vpop.xlane.xlu0 %1379 }
 0xa63   :  { %v1384_v56 = vsub.f32 %v1297_v43, %v1380_v55 }
 0xa65   :  { %v1386_v57 = vmul.f32 1.442695, %v1384_v56  ;;  %v1716_v56 = vld [vmem:[%s5293_s6] sm:$0xff] }
 0xa66   :  { %v1383_v58 = vpop.xlane.xlu1 %1382 }
 0xa67   :  { %4387 = vpow2.f32 %v1386_v57  ;;  %v1385_v59 = vsub.f32 %v1375_v51, %v1383_v58  ;;  %v1717_v57 = vld [vmem:[%s5293_s6 + $0x8] sm:$0xff] }
 0xa68   :  { %v4273_v58 = vpack.c.bf16 %v1717_v57, %v1716_v56 }
 0xa69   :  { %v1388_v60 = vmul.f32 1.442695, %v1385_v59  ;;  %v1718_v59 = vld [vmem:[%s5293_s6 + $0x10] sm:$0xff] }
 0xa6a   :  { %v1477_v62 = vpop.permute.xlu1 %1476 }
 0xa6b   :  { %4389 = vpow2.f32 %v1388_v60  ;;  %4080 = vmatpush3.msra.mxu1 %v1477_v62  ;;  %v1719_v60 = vld [vmem:[%s5293_s6 + $0x18] sm:$0xff] }
 0xa6c   :  { %4274 = vmatprep.subr.bf16.mxu1 %v4273_v58  ;;  %v4277_v62 = vpack.c.bf16 %v1719_v60, %v1718_v59  ;;  %v3815_v59 = vld [vmem:[%s5289_s2 + $0x20] sm:$0xff]  ;;  %v3816_v60 = vld [vmem:[%s5289_s2 + $0x28] sm:$0xff] }
 0xa6e   :  { %v1555_v20 = vpop.permute.xlu1 %1554 }
 0xa6f   :  { %v1576_v24 = vsel %vm236_vm2, %v4786_v19, %v1555_v20  ;;  %v3806_v19 = vld [vmem:[#allocation7] ss:$0 sm:$0xff] }
 0xa71   :  { %v4388_v2 = vpop.eup %4387 }
 0xa72   :  { %v1390_v44 = vsel %vm236_vm2, %v4388_v2, 0.0  ;;  %v1557_v22 = vpop.permute.xlu1 %1556 }
 0xa73   :  { %1391 = vadd.xlane.f32.xlu0 %v1390_v44  ;;  %v1577_v32 = vsel %vm236_vm2, %v4788_v21, %v1557_v22  ;;  %v1811_v44 = vld [vmem:[%s5295_s8 + $0x8] sm:$0xff] }
 0xa75   :  { %v4390_v61 = vpop.eup %4389 }
 0xa76   :  { %v1393_v3 = vsel %vm236_vm2, %v4390_v61, 0.0  ;;  %v1565_v25 = vpop.permute.xlu1 %1564 }
 0xa77   :  { %1394 = vadd.xlane.f32.xlu0 %v1393_v3  ;;  %v1580_v33 = vsel %vm1578_vm4, %v1577_v32, %v1565_v25  ;;  %v3809_v32 = vld [vmem:[%s5294_s7] ss:$0 sm:$0xff] }
 0xa8d   :  { %1400 = vrot.lane.b32.xlu0 %v4722_v46, %s4560_s16  ;;  %v1584_v46 = vld [vmem:[%s5291_s4] sm:$0xff] }
 0xa8e   :  { %v4265_v11 = vpack.c.bf16 %v1585_v10, %v1584_v46 }
 0xa91   :  { %1562 = vrot.lane.b32.xlu0 %v1142_v38, %s5303_s13 }
 0xb00   :  { %v1392_v63 = vpop.xlane.xlu0 %1391 }
 0xb01   :  { %4391 = vrcp.f32 %v1392_v63  ;;  %v1813_v63 = vld [vmem:[%s5295_s8 + $0x18] sm:$0xff] }
 0xb04   :  { %v1395_v4 = vpop.xlane.xlu0 %1394 }
 0xb05   :  { %4393 = vrcp.f32 %v1395_v4 }
 0xb08   :  { %v1401_v5 = vpop.permute.xlu0 %1400 }
 0xb09   :  { %4075 = vmatpush3.msra.mxu0 %v1401_v5  ;;  %v1814_v5 = vld [vmem:[%s5295_s8 + $0x20] sm:$0xff] }
 0xb0a   :  { %4266 = vmatprep.subr.bf16.mxu0 %v4265_v11 }
 0xb0b   :  { %v4392_v6 = vpop.eup %4391 }
 0xb0c   :  { %v1398_v7 = vmul.f32 %v4392_v6, %v4388_v2  ;;  %v1563_v23 = vpop.permute.xlu0 %1562  ;;  %v1810_v2 = vld [vmem:[%s5295_s8] sm:$0xff]  ;;  %v1815_v6 = vld [vmem:[%s5295_s8 + $0x28] sm:$0xff] }
 0xb0d   :  { %v1579_v27 = vsel %vm1578_vm4, %v1576_v24, %v1563_v23  ;;  %v4281_v3 = vpack.c.bf16 %v1811_v44, %v1810_v2  ;;  %v3817_v2 = vld [vmem:[%s5289_s2 + $0x30] sm:$0xff]  ;;  %v3818_v44 = vld [vmem:[%s5289_s2 + $0x38] sm:$0xff] }
 0xb0e   :  { %4077 = vmatmul.mubr.msk.f32.vlgmr.msra.gmra.mrb[12].mxu0 %vm236_vm2, %v1398_v7  ;;  %v4289_v7 = vpack.c.bf16 %v1815_v6, %v1814_v5 }
 0xb0f   :  { %v4394_v8 = vpop.eup %4393  ;;  %4268 = vmatpush3.bf16.msra.mxu0 %v4265_v11 }
 0xb10   :  { %v1399_v9 = vmul.f32 %v4394_v8, %v4390_v61  ;;  %4270 = vmatprep.subr.bf16.mxu0 %v4269_v14  ;;  %v1812_v61 = vld [vmem:[%s5295_s8 + $0x10] sm:$0xff] }
 0xb11   :  { %v4285_v4 = vpack.c.bf16 %v1813_v63, %v1812_v61  ;;  %v4301_v61 = vpack.c.bf16 %v3818_v44, %v3817_v2 }
 0xb12   :  { %4082 = vmatmul.mubr.msk.f32.vlgmr.msra.gmra.mrb[18].mxu1 %vm236_vm2, %v1399_v9 }
 0xb13   :  { %4272 = vmatpush3.bf16.msra.mxu0 %v4269_v14  ;;  %4276 = vmatpush3.bf16.msra.mxu1 %v4273_v58  ;;  %v1707_v14 = vrot.slane %v4703_v29, %v1706_v13 }
 0xb14   :  { %4278 = vmatprep.subr.bf16.mxu1 %v4277_v62  ;;  %4282 = vmatprep.subr.bf16.mxu0 %v4281_v3 }
 0xb17   :  { %4280 = vmatpush3.bf16.msra.mxu1 %v4277_v62  ;;  %v4297_v62 = vpack.c.bf16 %v3816_v60, %v3815_v59 }
 0xb19   :  { %4298 = vmatprep.subr.bf16.mxu1 %v4297_v62 }
 0xbe1   :  { %v1472_v15 = vpop.f32.mrb[12].mxu0 }
 0xbe2   :  { %1570 = vrot.lane.b32.xlu0 %v1472_v15, %s5301_s17  ;;  %v4078_v16 = vpop.f32.mrb[13].mxu0 }
 0xbe5   :  { %v1548_v17 = vpop.f32.mrb[18].mxu1 }
 0xbe6   :  { %1572 = vrot.lane.b32.xlu1 %v1548_v17, %s5301_s17  ;;  %v4083_v18 = vpop.f32.mrb[19].mxu1  ;;  %v1713_v17 = vrot.slane %v4708_v30, %v1706_v13 }
 0xc54   :  { %v1571_v28 = vpop.permute.xlu0 %1570 }
 0xc55   :  { %v1582_v31 = vsel %vm1581_vm3, %v1579_v27, %v1571_v28  ;;  %v1816_v27 = vld [vmem:[%s5295_s8 + $0x30] sm:$0xff]  ;;  %v1817_v28 = vld [vmem:[%s5295_s8 + $0x38] sm:$0xff] }
 0xc56   :  { %4092 = vmatprep.mubr.msk.f32.mxu0 %vm89_vm0, %v1582_v31  ;;  %v4293_v31 = vpack.c.bf16 %v1817_v28, %v1816_v27 }
 0xc58   :  { %v1573_v34 = vpop.permute.xlu1 %1572 }
 0xc59   :  { %v1583_v35 = vsel %vm1581_vm3, %v1580_v33, %v1573_v34 }
 0xc5a   :  { %4093 = vmatmul.mubr.msk.f32.vlgmr.msra.gmra.mrb[14].mxu0 %vm89_vm0, %v1583_v35 }
 0xc5b   :  { %4284 = vmatpush3.bf16.msra.mxu0 %v4281_v3 }
 0xc5c   :  { %4286 = vmatprep.subr.bf16.mxu0 %v4285_v4 }
 0xc5f   :  { %4288 = vmatpush3.bf16.msra.mxu0 %v4285_v4 }
 0xc60   :  { %4290 = vmatprep.subr.bf16.mxu0 %v4289_v7 }
 0xc63   :  { %4292 = vmatpush3.bf16.msra.mxu0 %v4289_v7 }
 0xc64   :  { %4294 = vmatprep.subr.bf16.mxu0 %v4293_v31 }
 0xc67   :  { %4296 = vmatpush3.bf16.msra.mxu0 %v4293_v31 }
 0xc68   :  { %4146 = vmatprep.subr.mxu0 %v4548_v41 }
 0xd2d   :  { %v4094_v36 = vpop.f32.mrb[14].mxu0 }
 0xd2e   :  { %v1673_v37 = vadd.f32 %v4094_v36, %v3806_v19  ;;  %v1667_v38 = vpop.f32.mrb[15].mxu0 }
 0xd2f   :  { %v1668_v39 = vadd.f32 %v3806_v19, %v1667_v38  ;;  %v3812_v38 = vld [vmem:[%s5296_s9] ss:$0 sm:$0xff] }
 0xd30   :  { %v4909_v40 = vadd.f32 %v1673_v37, %v4675_v1 }
 0xd31   :  { %v4912_v42 = vadd.f32 %v1668_v39, %v4673_v0 }
 0xd32   :  { %v1681_v21 = vsel %vm89_vm0, %v4909_v40, 0.0 }
 0xd33   :  { %1682 = vadd.xlane.f32.xlu1 %v1681_v21  ;;  %v1678_v43 = vsel %vm89_vm0, %v4912_v42, 0.0 }
 0xd34   :  { %1679 = vadd.xlane.f32.xlu0 %v1678_v43 }
 0xdc0   :  { %v1683_v45 = vpop.xlane.xlu1 %1682 }
 0xdc1   :  { %v1685_v47 = vmul.f32 0.03125, %v1683_v45  ;;  %v1680_v48 = vpop.xlane.xlu0 %1679 }
 0xdc2   :  { %v1684_v50 = vmul.f32 0.03125, %v1680_v48 }
 0xdc3   :  { %v1687_v51 = vsub.f32 %v4909_v40, %v1685_v47 }
 0xdc4   :  { %v1686_v1 = vsub.f32 %v4912_v42, %v1684_v50 }
 0xdc5   :  { %v1689_v54 = vmul.f32 %v1687_v51, %v1687_v51 }
 0xdc6   :  { %v1688_v52 = vmul.f32 %v1686_v1, %v1686_v1 }
 0xdc7   :  { %v1693_v55 = vsel %vm89_vm0, %v1689_v54, 0.0 }
 0xdc8   :  { %v1690_v0 = vsel %vm89_vm0, %v1688_v52, 0.0 }
 0xdc9   :  { %1691 = vadd.xlane.f32.xlu0 %v1690_v0 }
 0xdcd   :  { %1694 = vadd.xlane.f32.xlu0 %v1693_v55 }
 0xe56   :  { %v1692_v8 = vpop.xlane.xlu0 %1691 }
 0xe57   :  { %v1696_v9 = vmul.f32 0.03125, %v1692_v8  ;;  %v1937_v8 = vsub.s32 2, %v4697_v26 }
 0xe59   :  { %v1698_v46 = vadd.f32 1e-06, %v1696_v9  ;;  %v1938_v9 = vrot.slane %v4703_v29, %v1937_v8  ;;  %v1944_v13 = vrot.slane %v4708_v30, %v1937_v8 }
 0xe5a   :  { %v1695_v10 = vpop.xlane.xlu0 %1694 }
 0xe5b   :  { %4395 = vrsqrt.f32 %v1698_v46  ;;  %v1697_v11 = vmul.f32 0.03125, %v1695_v10 }
 0xe5d   :  { %v1699_v12 = vadd.f32 1e-06, %v1697_v11 }
 0xe5f   :  { %4397 = vrsqrt.f32 %v1699_v12 }
 0xe65   :  { %v4396_v15 = vpop.eup %4395 }
 0xe66   :  { %v1702_v16 = vmul.f32 %v4396_v15, %v1686_v1 }
 0xe68   :  { %v1708_v18 = vmul.f32 %v1707_v14, %v1702_v16 }
 0xe69   :  { %v4398_v20 = vpop.eup %4397 }
 0xe6a   :  { %v1703_v22 = vmul.f32 %v4398_v20, %v1687_v51  ;;  %v1714_v23 = vadd.f32 %v1713_v17, %v1708_v18  ;;  %v3819_v18 = vld [vmem:[#allocation5 + $0x1] ss:$0 sm:$0xff] }
 0xe6c   :  { %v1709_v24 = vmul.f32 %v1707_v14, %v1703_v22  ;;  %4103 = vmatprep.mubr.msk.f32.mxu1 %vm89_vm0, %v1714_v23 }
 0xe6e   :  { %v1715_v25 = vadd.f32 %v1713_v17, %v1709_v24 }
 0xe70   :  { %4104 = vmatmul.mubr.msk.f32.vlgmr.msra.gmra.mrb[20].mxu1 %vm89_vm0, %v1715_v25 }
 0xe71   :  { %4300 = vmatpush3.bf16.msra.mxu1 %v4297_v62 }
 0xe72   :  { %4302 = vmatprep.subr.bf16.mxu1 %v4301_v61 }
 0xe75   :  { %4304 = vmatpush3.bf16.msra.mxu1 %v4301_v61 }
 0xe76   :  { %4136 = vmatprep.subr.mxu1 %v4548_v41 }
 0xf43   :  { %v4105_v33 = vpop.f32.mrb[20].mxu1 }
 0xf44   :  { %v1805_v34 = vadd.f32 %v4105_v33, %v3809_v32  ;;  %v1799_v35 = vpop.f32.mrb[21].mxu1 }
 0xf45   :  { %v1800_v19 = vadd.f32 %v3809_v32, %v1799_v35 }
 0xf46   :  { %v1809_v37 = vmax.f32 %v1805_v34, 0.0 }
 0xf47   :  { %v1808_v36 = vmax.f32 %v1800_v19, 0.0 }
 0xf49   :  { %4122 = vmatprep.mubr.msk.f32.mxu0 %vm1825_vm5, %v1808_v36 }
 0xf4a   :  { %4123 = vmatmul.mubr.msk.f32.vlgmr.msra.gmra.mrb[16].mxu0 %vm1825_vm5, %v1809_v37 }
 0xf4b   :  { %4148 = vmatprep.mubr.msk.f32.mxu0 %vm4549_vm1, %v4548_v41 }
0x101d   :  { %v4124_v39 = vpop.f32.mrb[16].mxu0 }
0x101e   :  { %v1904_v21 = vadd.f32 %v4124_v39, %v3812_v38  ;;  %v1898_v43 = vpop.f32.mrb[17].mxu0 }
0x101f   :  { %v1899_v45 = vadd.f32 %v3812_v38, %v1898_v43 }
0x1020   :  { %v4975_v47 = vadd.f32 %v1904_v21, %v4909_v40 }
0x1021   :  { %v4978_v48 = vadd.f32 %v1899_v45, %v4912_v42 }
0x1022   :  { %v1912_v50 = vsel %vm89_vm0, %v4975_v47, 0.0 }
0x1023   :  { %1913 = vadd.xlane.f32.xlu1 %v1912_v50  ;;  %v1909_v51 = vsel %vm89_vm0, %v4978_v48, 0.0 }
0x1024   :  { %1910 = vadd.xlane.f32.xlu0 %v1909_v51 }
0x10b0   :  { %v1914_v1 = vpop.xlane.xlu1 %1913 }
0x10b1   :  { %v1916_v52 = vmul.f32 0.03125, %v1914_v1  ;;  %v1911_v0 = vpop.xlane.xlu0 %1910 }
0x10b2   :  { %v1915_v54 = vmul.f32 0.03125, %v1911_v0 }
0x10b3   :  { %v1918_v55 = vsub.f32 %v4975_v47, %v1916_v52 }
0x10b4   :  { %v1917_v40 = vsub.f32 %v4978_v48, %v1915_v54 }
0x10b5   :  { %v1920_v56 = vmul.f32 %v1918_v55, %v1918_v55 }
0x10b6   :  { %v1919_v57 = vmul.f32 %v1917_v40, %v1917_v40 }
0x10b7   :  { %v1924_v42 = vsel %vm89_vm0, %v1920_v56, 0.0 }
0x10b8   :  { %1925 = vadd.xlane.f32.xlu1 %v1924_v42  ;;  %v1921_v58 = vsel %vm89_vm0, %v1919_v57, 0.0 }
0x10b9   :  { %1922 = vadd.xlane.f32.xlu0 %v1921_v58 }
0x1145   :  { %v1926_v3 = vpop.xlane.xlu1 %1925 }
0x1146   :  { %v1928_v63 = vmul.f32 0.03125, %v1926_v3  ;;  %v1923_v4 = vpop.xlane.xlu0 %1922 }
0x1147   :  { %v1927_v5 = vmul.f32 0.03125, %v1923_v4 }
0x1148   :  { %v1930_v6 = vadd.f32 1e-06, %v1928_v63 }
0x1149   :  { %v1929_v7 = vadd.f32 1e-06, %v1927_v5 }
0x114a   :  { %4399 = vrsqrt.f32 %v1930_v6 }
0x114b   :  { %4401 = vrsqrt.f32 %v1929_v7 }
0x1154   :  { %v4400_v46 = vpop.eup %4399 }
0x1155   :  { %v4402_v10 = vpop.eup %4401  ;;  %v1934_v11 = vmul.f32 %v4400_v46, %v1918_v55 }
0x1156   :  { %v1933_v12 = vmul.f32 %v4402_v10, %v1917_v40 }
0x1157   :  { %v1940_v14 = vmul.f32 %v1938_v9, %v1934_v11 }
0x1158   :  { %v1939_v15 = vmul.f32 %v1938_v9, %v1933_v12 }
0x1159   :  { %v1946_v17 = vadd.f32 %v1944_v13, %v1940_v14 }
0x115a   :  { %v1945_v16 = vadd.f32 %v1944_v13, %v1939_v15 }
0x115c   :  { %4133 = vmatprep.mubr.msk.f32.mxu1 %vm89_vm0, %v1945_v16 }
0x115d   :  { %4134 = vmatmul.mubr.msk.f32.vlgmr.msra.gmra.mrb[22].mxu1 %vm89_vm0, %v1946_v17 }
0x115e   :  { %4138 = vmatprep.mubr.msk.f32.mxu1 %vm4549_vm1, %v4548_v41 }
0x1230   :  { %v4135_v20 = vpop.f32.mrb[22].mxu1 }
0x1231   :  { %v5008_v29 = vadd.f32 %v4135_v20, %v3819_v18  ;;  %v2032_v22 = vpop.f32.mrb[23].mxu1 }
0x1232   :  { %v5010_v23 = vadd.f32 %v3819_v18, %v2032_v22 }
0x1233   :  { %2119 = vrot.lane.b32.xlu1 %v5008_v29, %s4550_s21 }
0x1234   :  { %2042 = vrot.lane.b32.xlu0 %v5010_v23, %s4550_s21 }
0x12a5   :  { %v2120_v24 = vpop.permute.xlu1 %2119 }
0x12a6   :  { %v2043_v30 = vpop.permute.xlu0 %2042 }
0x12a7   :  { %4137 = vmatpush3.xpose.msk.msra.mxu1 %vm236_vm2, %v2043_v30 }
0x12a8   :  { %4141 = vmatprep.subr.mxu1 %v4548_v41 }
0x12aa   :  { %4139 = vmatmul.mubr.msk.f32.vlgmr.msra.gmra.mrb[24].mxu1 %vm236_vm2, %v5010_v23 }
0x12ab   :  { %4142 = vmatpush3.xpose.msk.msra.mxu1 %vm236_vm2, %v2120_v24  ;;  %4143 = vmatprep.mubr.msk.f32.mxu1 %vm4549_vm1, %v4548_v41 }
0x12ac   :  { %4151 = vmatprep.subr.mxu1 %v4548_v41 }
0x12ae   :  { %4144 = vmatmul.mubr.msk.f32.vlgmr.msra.gmra.mrb[26].mxu1 %vm236_vm2, %v5008_v29 }
0x12af   :  { %4153 = vmatprep.mubr.msk.f32.mxu1 %vm4549_vm1, %v4548_v41 }
0x137d   :  { %v2114_v25 = vpop.f32.mrb[24].mxu1 }
0x137e   :  { %v2115_v27 = vadd.f32 %v4743_v49, %v2114_v25  ;;  %v4140_v28 = vpop.f32.mrb[25].mxu1 }
0x1380   :  { %v2195_v31 = vsel %vm236_vm2, %v2115_v27, -inf }
0x1381   :  { %2196 = vmax.xlane.f32.xlu1 %v2195_v31  ;;  %v2191_v32 = vpop.f32.mrb[26].mxu1 }
0x1382   :  { %v2192_v33 = vadd.f32 %v4749_v53, %v2191_v32  ;;  %v4145_v34 = vpop.f32.mrb[27].mxu1 }
0x1384   :  { %v2198_v35 = vsel %vm236_vm2, %v2192_v33, -inf }
0x1385   :  { %2199 = vmax.xlane.f32.xlu0 %v2198_v35 }
0x1392   :  { %2293 = vrot.lane.b32.xlu1 %v5008_v29, %s4551_s18 }
0x1396   :  { %2371 = vrot.lane.b32.xlu1 %v5010_v23, %s4552_s5 }
0x139a   :  { %2449 = vrot.lane.b32.xlu1 %v5008_v29, %s4552_s5 }
0x139b   :  { %2217 = vrot.lane.b32.xlu0 %v5010_v23, %s4551_s18 }
0x140e   :  { %v2197_v19 = vpop.xlane.xlu1 %2196 }
0x140f   :  { %v2201_v36 = vsub.f32 %v2115_v27, %v2197_v19 }
0x1411   :  { %v2203_v37 = vmul.f32 1.442695, %v2201_v36 }
0x1412   :  { %v2294_v38 = vpop.permute.xlu1 %2293  ;;  %v2200_v39 = vpop.xlane.xlu0 %2199 }
0x1413   :  { %4403 = vpow2.f32 %v2203_v37  ;;  %v2202_v21 = vsub.f32 %v2192_v33, %v2200_v39  ;;  %4152 = vmatpush3.msra.mxu1 %v2294_v38  ;;  %v5111_v37 = vld [vmem:[%s5288_s1] ss:$0 sm:$0xff] }
0x1414   :  { %4161 = vmatprep.subr.mxu1 %v4548_v41 }
0x1415   :  { %v2205_v43 = vmul.f32 1.442695, %v2202_v21 }
0x1416   :  { %v2218_v45 = vpop.permute.xlu0 %2217  ;;  %v2372_v0 = vpop.permute.xlu1 %2371 }
0x1417   :  { %4405 = vpow2.f32 %v2205_v43  ;;  %4147 = vmatpush3.msra.mxu0 %v2218_v45 }
0x1418   :  { %4156 = vmatprep.subr.mxu0 %v4548_v41 }
0x141a   :  { %v2450_v54 = vpop.permute.xlu1 %2449 }
0x141d   :  { %v4404_v50 = vpop.eup %4403 }
0x141e   :  { %v2207_v51 = vsel %vm236_vm2, %v4404_v50, 0.0 }
0x141f   :  { %2208 = vadd.xlane.f32.xlu0 %v2207_v51 }
0x1421   :  { %v4406_v1 = vpop.eup %4405 }
0x1422   :  { %v2210_v52 = vsel %vm236_vm2, %v4406_v1, 0.0 }
0x1423   :  { %2211 = vadd.xlane.f32.xlu1 %v2210_v52 }
0x1434   :  { %2447 = vrot.lane.b32.xlu1 %v5008_v29, %s4553_s14 }
0x1435   :  { %2369 = vrot.lane.b32.xlu0 %v5010_v23, %s4553_s14  ;;  %s5308_s14 = smov 16  }
0x14ac   :  { %v2209_v55 = vpop.xlane.xlu0 %2208 }
0x14ad   :  { %4407 = vrcp.f32 %v2209_v55 }
0x14b0   :  { %v2212_v40 = vpop.xlane.xlu1 %2211  ;;  %v2370_v59 = vpop.permute.xlu0 %2369 }
0x14b1   :  { %4409 = vrcp.f32 %v2212_v40 }
0x14b4   :  { %v2448_v60 = vpop.permute.xlu1 %2447 }
0x14b7   :  { %v4408_v56 = vpop.eup %4407 }
0x14b8   :  { %v2215_v57 = vmul.f32 %v4408_v56, %v4404_v50  ;;  %v5118_v50 = vld [vmem:[%s5288_s1 + $0x1] ss:$0 sm:$0xff]  ;;  %s5307_s1 = smov 8  }
0x14ba   :  { %4149 = vmatmul.mubr.msk.f32.vlgmr.msra.gmra.mrb[18].mxu0 %vm236_vm2, %v2215_v57 }
0x14bb   :  { %v4410_v42 = vpop.eup %4409  ;;  %4157 = vmatpush3.xpose.msk.msra.mxu0 %vm236_vm2, %v2372_v0  ;;  %4158 = vmatprep.mubr.msk.f32.mxu0 %vm4549_vm1, %v4548_v41 }
0x14bc   :  { %v2216_v58 = vmul.f32 %v4410_v42, %v4406_v1  ;;  %4166 = vmatprep.subr.mxu0 %v4548_v41 }
0x14be   :  { %4154 = vmatmul.mubr.msk.f32.vlgmr.msra.gmra.mrb[28].mxu1 %vm236_vm2, %v2216_v58  ;;  %4159 = vmatmul.mubr.msk.f32.vlgmr.msra.gmra.mrb[20].mxu0 %vm236_vm2, %v2370_v59 }
0x14bf   :  { %4162 = vmatpush3.xpose.msk.msra.mxu1 %vm236_vm2, %v2450_v54  ;;  %4163 = vmatprep.mubr.msk.f32.mxu1 %vm4549_vm1, %v4548_v41 }
0x14c0   :  { %4171 = vmatprep.subr.mxu1 %v4548_v41  ;;  %4168 = vmatprep.mubr.msk.f32.mxu0 %vm4549_vm1, %v4548_v41 }
0x14c2   :  { %4164 = vmatmul.mubr.msk.f32.vlgmr.msra.gmra.mrb[30].mxu1 %vm236_vm2, %v2448_v60 }
0x14c3   :  { %4173 = vmatprep.mubr.msk.f32.mxu1 %vm4549_vm1, %v4548_v41 }
0x158d   :  { %v5064_v62 = vpop.f32.mrb[18].mxu0 }
0x158e   :  { %v4150_v2 = vpop.f32.mrb[19].mxu0 }
0x1591   :  { %v5066_v44 = vpop.f32.mrb[28].mxu1  ;;  %v2443_v61 = vpop.f32.mrb[20].mxu0 }
0x1592   :  { %v2444_v3 = vadd.f32 %v4743_v49, %v2443_v61  ;;  %v4155_v63 = vpop.f32.mrb[29].mxu1  ;;  %v4160_v4 = vpop.f32.mrb[21].mxu0 }
0x1594   :  { %v2525_v5 = vsel %vm236_vm2, %v2444_v3, -inf }
0x1595   :  { %2526 = vmax.xlane.f32.xlu0 %v2525_v5  ;;  %v2521_v6 = vpop.f32.mrb[30].mxu1 }
0x1596   :  { %v2522_v7 = vadd.f32 %v4749_v53, %v2521_v6  ;;  %v4165_v8 = vpop.f32.mrb[31].mxu1 }
0x1598   :  { %v2528_v9 = vsel %vm236_vm2, %v2522_v7, -inf }
0x1599   :  { %2529 = vmax.xlane.f32.xlu1 %v2528_v9 }
0x15aa   :  { %2623 = vrot.lane.b32.xlu1 %v5008_v29, %s4554_s26 }
0x15ab   :  { %2547 = vrot.lane.b32.xlu0 %v5010_v23, %s4554_s26 }
0x15ae   :  { %2701 = vrot.lane.b32.xlu1 %v5010_v23, %s4555_s27 }
0x15b2   :  { %2779 = vrot.lane.b32.xlu1 %v5008_v29, %s4555_s27 }
0x15b6   :  { %2777 = vrot.lane.b32.xlu1 %v5008_v29, %s4556_s28 }
0x1622   :  { %v2527_v49 = vpop.xlane.xlu0 %2526 }
0x1623   :  { %v2531_v53 = vsub.f32 %v2444_v3, %v2527_v49 }
0x1625   :  { %v2533_v46 = vmul.f32 1.442695, %v2531_v53 }
0x1626   :  { %v2548_v10 = vpop.permute.xlu0 %2547  ;;  %v2530_v11 = vpop.xlane.xlu1 %2529 }
0x1627   :  { %4411 = vpow2.f32 %v2533_v46  ;;  %v2532_v12 = vsub.f32 %v2522_v7, %v2530_v11  ;;  %4167 = vmatpush3.msra.mxu0 %v2548_v10 }
0x1628   :  { %4176 = vmatprep.subr.mxu0 %v4548_v41 }
0x1629   :  { %v2535_v13 = vmul.f32 1.442695, %v2532_v12 }
0x162a   :  { %v2624_v14 = vpop.permute.xlu1 %2623 }
0x162b   :  { %4413 = vpow2.f32 %v2535_v13  ;;  %4172 = vmatpush3.msra.mxu1 %v2624_v14 }
0x162c   :  { %4181 = vmatprep.subr.mxu1 %v4548_v41 }
0x162e   :  { %v2702_v30 = vpop.permute.xlu1 %2701 }
0x1631   :  { %v4412_v15 = vpop.eup %4411 }
0x1632   :  { %v2537_v16 = vsel %vm236_vm2, %v4412_v15, 0.0  ;;  %v2780_v28 = vpop.permute.xlu1 %2779 }
0x1633   :  { %2538 = vadd.xlane.f32.xlu0 %v2537_v16 }
0x1635   :  { %v4414_v17 = vpop.eup %4413 }
0x1636   :  { %v2540_v18 = vsel %vm236_vm2, %v4414_v17, 0.0  ;;  %v2778_v33 = vpop.permute.xlu1 %2777 }
0x1637   :  { %2541 = vadd.xlane.f32.xlu0 %v2540_v18 }
0x164d   :  { %2699 = vrot.lane.b32.xlu0 %v5010_v23, %s4556_s28 }
0x16c0   :  { %v2539_v20 = vpop.xlane.xlu0 %2538 }
0x16c1   :  { %4415 = vrcp.f32 %v2539_v20 }
0x16c4   :  { %v2542_v22 = vpop.xlane.xlu0 %2541 }
0x16c5   :  { %4417 = vrcp.f32 %v2542_v22 }
0x16c8   :  { %v2700_v32 = vpop.permute.xlu0 %2699 }
0x16cb   :  { %v4416_v24 = vpop.eup %4415 }
0x16cc   :  { %v2545_v25 = vmul.f32 %v4416_v24, %v4412_v15 }
0x16ce   :  { %4169 = vmatmul.mubr.msk.f32.vlgmr.msra.gmra.mrb[22].mxu0 %vm236_vm2, %v2545_v25 }
0x16cf   :  { %v4418_v27 = vpop.eup %4417  ;;  %4177 = vmatpush3.xpose.msk.msra.mxu0 %vm236_vm2, %v2702_v30  ;;  %4178 = vmatprep.mubr.msk.f32.mxu0 %vm4549_vm1, %v4548_v41 }
0x16d0   :  { %v2546_v31 = vmul.f32 %v4418_v27, %v4414_v17  ;;  %4186 = vmatprep.subr.mxu0 %v4548_v41 }
0x16d2   :  { %4174 = vmatmul.mubr.msk.f32.vlgmr.msra.gmra.mrb[32].mxu1 %vm236_vm2, %v2546_v31  ;;  %4179 = vmatmul.mubr.msk.f32.vlgmr.msra.gmra.mrb[24].mxu0 %vm236_vm2, %v2700_v32 }
0x16d3   :  { %4182 = vmatpush3.xpose.msk.msra.mxu1 %vm236_vm2, %v2780_v28  ;;  %4183 = vmatprep.mubr.msk.f32.mxu1 %vm4549_vm1, %v4548_v41 }
0x16d4   :  { %4191 = vmatprep.subr.mxu1 %v4548_v41  ;;  %4188 = vmatprep.mubr.msk.f32.mxu0 %vm4549_vm1, %v4548_v41 }
0x16d6   :  { %4184 = vmatmul.mubr.msk.f32.vlgmr.msra.gmra.mrb[34].mxu1 %vm236_vm2, %v2778_v33 }
0x16d7   :  { %4193 = vmatprep.mubr.msk.f32.mxu1 %vm4549_vm1, %v4548_v41 }
0x17a1   :  { %v5104_v34 = vpop.f32.mrb[22].mxu0 }
0x17a2   :  { %v4170_v35 = vpop.f32.mrb[23].mxu0 }
0x17a5   :  { %v5106_v19 = vpop.f32.mrb[32].mxu1  ;;  %v2773_v36 = vpop.f32.mrb[24].mxu0 }
0x17a6   :  { %v2774_v38 = vadd.f32 %v5111_v37, %v2773_v36  ;;  %v4175_v39 = vpop.f32.mrb[33].mxu1  ;;  %v4180_v21 = vpop.f32.mrb[25].mxu0 }
0x17a8   :  { %v2855_v43 = vsel %vm236_vm2, %v2774_v38, -inf }
0x17a9   :  { %2856 = vmax.xlane.f32.xlu0 %v2855_v43  ;;  %v2851_v45 = vpop.f32.mrb[34].mxu1  ;;  %v3847_v43 = vld [vmem:[%s5291_s4 + $0x28] sm:$0xff] }
0x17aa   :  { %v2852_v51 = vadd.f32 %v5118_v50, %v2851_v45  ;;  %v4185_v1 = vpop.f32.mrb[35].mxu1 }
0x17ac   :  { %v2858_v52 = vsel %vm236_vm2, %v2852_v51, -inf }
0x17ad   :  { %2859 = vmax.xlane.f32.xlu1 %v2858_v52 }
0x17be   :  { %2953 = vrot.lane.b32.xlu1 %v5008_v29, %s4557_s29 }
0x17bf   :  { %2877 = vrot.lane.b32.xlu0 %v5010_v23, %s4557_s29 }
0x17c2   :  { %3031 = vrot.lane.b32.xlu1 %v5010_v23, %s4558_s30 }
0x17c6   :  { %3109 = vrot.lane.b32.xlu1 %v5008_v29, %s4558_s30 }
0x17ca   :  { %3107 = vrot.lane.b32.xlu1 %v5008_v29, %s4559_s15 }
0x1836   :  { %v2857_v0 = vpop.xlane.xlu0 %2856 }
0x1837   :  { %v2861_v54 = vsub.f32 %v2774_v38, %v2857_v0 }
0x1839   :  { %v2863_v55 = vmul.f32 1.442695, %v2861_v54 }
0x183a   :  { %v2878_v40 = vpop.permute.xlu0 %2877  ;;  %v2860_v56 = vpop.xlane.xlu1 %2859 }
0x183b   :  { %4419 = vpow2.f32 %v2863_v55  ;;  %v2862_v57 = vsub.f32 %v2852_v51, %v2860_v56  ;;  %4187 = vmatpush3.msra.mxu0 %v2878_v40  ;;  %v3849_v51 = vld [vmem:[%s5291_s4 + $0x38] sm:$0xff] }
0x183c   :  { %4196 = vmatprep.subr.mxu0 %v4548_v41 }
0x183d   :  { %v2865_v42 = vmul.f32 1.442695, %v2862_v57 }
0x183e   :  { %v2954_v58 = vpop.permute.xlu1 %2953 }
0x183f   :  { %4421 = vpow2.f32 %v2865_v42  ;;  %4192 = vmatpush3.msra.mxu1 %v2954_v58 }
0x1840   :  { %4201 = vmatprep.subr.mxu1 %v4548_v41 }
0x1842   :  { %v3032_v4 = vpop.permute.xlu1 %3031 }
0x1845   :  { %v4420_v59 = vpop.eup %4419 }
0x1846   :  { %v2867_v60 = vsel %vm236_vm2, %v4420_v59, 0.0  ;;  %v3110_v8 = vpop.permute.xlu1 %3109 }
0x1847   :  { %2868 = vadd.xlane.f32.xlu0 %v2867_v60 }
0x1849   :  { %v4422_v2 = vpop.eup %4421 }
0x184a   :  { %v2870_v61 = vsel %vm236_vm2, %v4422_v2, 0.0  ;;  %v3108_v53 = vpop.permute.xlu1 %3107 }
0x184b   :  { %2871 = vadd.xlane.f32.xlu0 %v2870_v61 }
0x1861   :  { %3029 = vrot.lane.b32.xlu0 %v5010_v23, %s4559_s15 }
0x18d4   :  { %v2869_v3 = vpop.xlane.xlu0 %2868 }
0x18d5   :  { %4423 = vrcp.f32 %v2869_v3 }
0x18d8   :  { %v2872_v63 = vpop.xlane.xlu0 %2871 }
0x18d9   :  { %4425 = vrcp.f32 %v2872_v63 }
0x18dc   :  { %v3030_v49 = vpop.permute.xlu0 %3029 }
0x18df   :  { %v4424_v5 = vpop.eup %4423 }
0x18e0   :  { %v2875_v6 = vmul.f32 %v4424_v5, %v4420_v59  ;;  %v3850_v5 = vld [vmem:[#allocation7 + $0x1] ss:$0 sm:$0xff] }
0x18e2   :  { %4189 = vmatmul.mubr.msk.f32.vlgmr.msra.gmra.mrb[26].mxu0 %vm236_vm2, %v2875_v6 }
0x18e3   :  { %v4426_v7 = vpop.eup %4425  ;;  %4197 = vmatpush3.xpose.msk.msra.mxu0 %vm236_vm2, %v3032_v4  ;;  %4198 = vmatprep.mubr.msk.f32.mxu0 %vm4549_vm1, %v4548_v41 }
0x18e4   :  { %v2876_v9 = vmul.f32 %v4426_v7, %v4422_v2  ;;  %4206 = vmatprep.subr.mxu0 %v4548_v41 }
0x18e6   :  { %4194 = vmatmul.mubr.msk.f32.vlgmr.msra.gmra.mrb[36].mxu1 %vm236_vm2, %v2876_v9  ;;  %4199 = vmatmul.mubr.msk.f32.vlgmr.msra.gmra.mrb[28].mxu0 %vm236_vm2, %v3030_v49 }
0x18e7   :  { %4202 = vmatpush3.xpose.msk.msra.mxu1 %vm236_vm2, %v3110_v8  ;;  %4203 = vmatprep.mubr.msk.f32.mxu1 %vm4549_vm1, %v4548_v41 }
0x18e8   :  { %4211 = vmatprep.subr.mxu1 %v4548_v41  ;;  %4208 = vmatprep.mubr.msk.f32.mxu0 %vm4549_vm1, %v4548_v41 }
0x18ea   :  { %4204 = vmatmul.mubr.msk.f32.vlgmr.msra.gmra.mrb[38].mxu1 %vm236_vm2, %v3108_v53 }
0x18eb   :  { %4213 = vmatprep.mubr.msk.f32.mxu1 %vm4549_vm1, %v4548_v41 }
0x19b5   :  { %v2949_v46 = vpop.f32.mrb[26].mxu0 }
0x19b6   :  { %v4190_v10 = vpop.f32.mrb[27].mxu0 }
0x19b9   :  { %v3025_v11 = vpop.f32.mrb[36].mxu1  ;;  %v3103_v12 = vpop.f32.mrb[28].mxu0 }
0x19ba   :  { %v3104_v13 = vadd.f32 %v5111_v37, %v3103_v12  ;;  %v4195_v14 = vpop.f32.mrb[37].mxu1  ;;  %v4200_v15 = vpop.f32.mrb[29].mxu0 }
0x19bc   :  { %v3185_v16 = vsel %vm236_vm2, %v3104_v13, -inf }
0x19bd   :  { %3186 = vmax.xlane.f32.xlu0 %v3185_v16  ;;  %v3181_v17 = vpop.f32.mrb[38].mxu1 }
0x19be   :  { %v3182_v18 = vadd.f32 %v5118_v50, %v3181_v17  ;;  %v4205_v20 = vpop.f32.mrb[39].mxu1  ;;  %v3848_v50 = vld [vmem:[%s5291_s4 + $0x30] sm:$0xff]  ;;  %v3853_v17 = vld [vmem:[%s5293_s6 + $0x20] sm:$0xff] }
0x19bf   :  { %v4309_v1 = vpack.c.bf16 %v3849_v51, %v3848_v50  ;;  %v4446_v51 = vld [vmem:[%s5298_s11] sm:$0x1f] }
0x19c0   :  { %v3188_v22 = vsel %vm236_vm2, %v3182_v18, -inf }
0x19c1   :  { %3189 = vmax.xlane.f32.xlu1 %v3188_v22  ;;  %v3855_v22 = vld [vmem:[%s5293_s6 + $0x30] sm:$0xff] }
0x19d2   :  { %3283 = vrot.lane.b32.xlu1 %v5008_v29, %s4560_s16 }
0x19d6   :  { %3361 = vrot.lane.b32.xlu1 %v5104_v34, %s5307_s1 }
0x19da   :  { %3363 = vrot.lane.b32.xlu1 %v5106_v19, %s5307_s1 }
0x19de   :  { %3371 = vrot.lane.b32.xlu1 %v3025_v11, %s5308_s14 }
0x1a4a   :  { %v3187_v41 = vpop.xlane.xlu0 %3186 }
0x1a4b   :  { %v3191_v30 = vsub.f32 %v3104_v13, %v3187_v41  ;;  %v3856_v41 = vld [vmem:[%s5293_s6 + $0x38] sm:$0xff] }
0x1a4d   :  { %v3193_v24 = vmul.f32 1.442695, %v3191_v30  ;;  %v4317_v30 = vpack.c.bf16 %v3856_v41, %v3855_v22 }
0x1a4e   :  { %v3190_v25 = vpop.xlane.xlu1 %3189 }
0x1a4f   :  { %4427 = vpow2.f32 %v3193_v24  ;;  %v3192_v27 = vsub.f32 %v3182_v18, %v3190_v25  ;;  %v3854_v18 = vld [vmem:[%s5293_s6 + $0x28] sm:$0xff]  ;;  %v3861_v24 = vld [vmem:[%s5295_s8 + $0x40] sm:$0xff] }
0x1a50   :  { %v4313_v20 = vpack.c.bf16 %v3854_v18, %v3853_v17  ;;  %v3862_v25 = vld [vmem:[%s5295_s8 + $0x48] sm:$0xff] }
0x1a51   :  { %v3195_v28 = vmul.f32 1.442695, %v3192_v27  ;;  %v3863_v27 = vld [vmem:[%s5295_s8 + $0x50] sm:$0xff] }
0x1a52   :  { %v3284_v31 = vpop.permute.xlu1 %3283 }
0x1a53   :  { %4429 = vpow2.f32 %v3195_v28  ;;  %4212 = vmatpush3.msra.mxu1 %v3284_v31  ;;  %v4321_v28 = vpack.c.bf16 %v3862_v25, %v3861_v24  ;;  %v3864_v31 = vld [vmem:[%s5295_s8 + $0x58] sm:$0xff]  ;;  %v3747_v24 = vsub.s32 4, %v4697_v26 }
0x1a54   :  { %4314 = vmatprep.subr.bf16.mxu1 %v4313_v20 }
0x1a56   :  { %v3362_v40 = vpop.permute.xlu1 %3361 }
0x1a57   :  { %v3383_v42 = vsel %vm236_vm2, %v5064_v62, %v3362_v40 }
0x1a59   :  { %v4428_v32 = vpop.eup %4427 }
0x1a5a   :  { %v3197_v29 = vsel %vm236_vm2, %v4428_v32, 0.0  ;;  %v3364_v56 = vpop.permute.xlu1 %3363 }
0x1a5b   :  { %3198 = vadd.xlane.f32.xlu0 %v3197_v29  ;;  %v3384_v61 = vsel %vm236_vm2, %v5066_v44, %v3364_v56  ;;  %v3865_v29 = vld [vmem:[%s5295_s8 + $0x60] sm:$0xff] }
0x1a5d   :  { %v4430_v33 = vpop.eup %4429 }
0x1a5e   :  { %v3200_v34 = vsel %vm236_vm2, %v4430_v33, 0.0  ;;  %v3372_v58 = vpop.permute.xlu1 %3371 }
0x1a5f   :  { %3201 = vadd.xlane.f32.xlu0 %v3200_v34  ;;  %v3386_v3 = vsel %vm1578_vm4, %v3384_v61, %v3372_v58 }
0x1a75   :  { %3207 = vrot.lane.b32.xlu0 %v5010_v23, %s4560_s16  ;;  %v3846_v23 = vld [vmem:[%s5291_s4 + $0x20] sm:$0xff] }
0x1a76   :  { %v4305_v45 = vpack.c.bf16 %v3847_v43, %v3846_v23  ;;  %v4445_v23 = vld [vmem:[%s5297_s10] sm:$0x1f] }
0x1a77   :  { %v3748_v25 = vrot.slane %v4445_v23, %v3747_v24 }
0x1a79   :  { %3369 = vrot.lane.b32.xlu0 %v2949_v46, %s5308_s14 }
0x1ae8   :  { %v3199_v35 = vpop.xlane.xlu0 %3198 }
0x1ae9   :  { %4431 = vrcp.f32 %v3199_v35 }
0x1aec   :  { %v3202_v19 = vpop.xlane.xlu0 %3201 }
0x1aed   :  { %4433 = vrcp.f32 %v3202_v19 }
0x1af0   :  { %v3208_v36 = vpop.permute.xlu0 %3207 }
0x1af1   :  { %4207 = vmatpush3.msra.mxu0 %v3208_v36 }
0x1af2   :  { %4306 = vmatprep.subr.bf16.mxu0 %v4305_v45 }
0x1af3   :  { %v4432_v37 = vpop.eup %4431 }
0x1af4   :  { %v3205_v38 = vmul.f32 %v4432_v37, %v4428_v32  ;;  %v3370_v57 = vpop.permute.xlu0 %3369  ;;  %v4325_v32 = vpack.c.bf16 %v3864_v31, %v3863_v27 }
0x1af5   :  { %v3385_v59 = vsel %vm1578_vm4, %v3383_v42, %v3370_v57  ;;  %v3867_v57 = vld [vmem:[%s5295_s8 + $0x70] sm:$0xff]  ;;  %v3868_v42 = vld [vmem:[%s5295_s8 + $0x78] sm:$0xff] }
0x1af6   :  { %4209 = vmatmul.mubr.msk.f32.vlgmr.msra.gmra.mrb[30].mxu0 %vm236_vm2, %v3205_v38  ;;  %v4333_v58 = vpack.c.bf16 %v3868_v42, %v3867_v57 }
0x1af7   :  { %v4434_v39 = vpop.eup %4433  ;;  %4308 = vmatpush3.bf16.msra.mxu0 %v4305_v45 }
0x1af8   :  { %v3206_v21 = vmul.f32 %v4434_v39, %v4430_v33  ;;  %4310 = vmatprep.subr.bf16.mxu0 %v4309_v1  ;;  %v3866_v33 = vld [vmem:[%s5295_s8 + $0x68] sm:$0xff] }
0x1af9   :  { %v4329_v34 = vpack.c.bf16 %v3866_v33, %v3865_v29 }
0x1afa   :  { %4214 = vmatmul.mubr.msk.f32.vlgmr.msra.gmra.mrb[40].mxu1 %vm236_vm2, %v3206_v21  ;;  %v3513_v21 = vsub.s32 3, %v4697_v26 }
0x1afb   :  { %4312 = vmatpush3.bf16.msra.mxu0 %v4309_v1  ;;  %4316 = vmatpush3.bf16.msra.mxu1 %v4313_v20 }
0x1afc   :  { %4318 = vmatprep.subr.bf16.mxu1 %v4317_v30  ;;  %4322 = vmatprep.subr.bf16.mxu0 %v4321_v28  ;;  %v3514_v43 = vrot.slane %v4445_v23, %v3513_v21  ;;  %v3520_v1 = vrot.slane %v4446_v51, %v3513_v21 }
0x1aff   :  { %4320 = vmatpush3.bf16.msra.mxu1 %v4317_v30 }
0x1bc9   :  { %v3279_v52 = vpop.f32.mrb[30].mxu0 }
0x1bca   :  { %3377 = vrot.lane.b32.xlu0 %v3279_v52, %s5309_s0  ;;  %v4210_v0 = vpop.f32.mrb[31].mxu0 }
0x1bcd   :  { %v3355_v54 = vpop.f32.mrb[40].mxu1 }
0x1bce   :  { %3379 = vrot.lane.b32.xlu1 %v3355_v54, %s5309_s0  ;;  %v4215_v55 = vpop.f32.mrb[41].mxu1 }
0x1c3c   :  { %v3378_v60 = vpop.permute.xlu0 %3377 }
0x1c3d   :  { %v3387_v2 = vsel %vm1581_vm3, %v3385_v59, %v3378_v60  ;;  %v3858_v59 = vld [vmem:[%s5294_s7 + $0x1] ss:$0 sm:$0xff]  ;;  %s4562_s7 = smov [#allocation8]  }
0x1c3e   :  { %4224 = vmatprep.mubr.msk.f32.mxu0 %vm89_vm0, %v3387_v2  ;;  %s3764_s8 = sshll.u32 %s4562_s7, 4  ;;  %s3765_s8 = int_to_ptr.vmem [resolvable:$true] %s3764_s8 }
0x1c3f   :  { %p4518_p11 = scmp.lt.s32.totalorder %s3765_s8, %s3765_s8 }
0x1c40   :  { %v3380_v63 = vpop.permute.xlu1 %3379 }
0x1c41   :  { %v3388_v4 = vsel %vm1581_vm3, %v3386_v3, %v3380_v63 }
0x1c42   :  { %4225 = vmatmul.mubr.msk.f32.vlgmr.msra.gmra.mrb[32].mxu0 %vm89_vm0, %v3388_v4 }
0x1c43   :  { %4324 = vmatpush3.bf16.msra.mxu0 %v4321_v28 }
0x1c44   :  { %4326 = vmatprep.subr.bf16.mxu0 %v4325_v32 }
0x1c47   :  { %4328 = vmatpush3.bf16.msra.mxu0 %v4325_v32  ;;  %v3754_v32 = vrot.slane %v4446_v51, %v3747_v24 }
0x1c48   :  { %4330 = vmatprep.subr.bf16.mxu0 %v4329_v34 }
0x1c4b   :  { %4332 = vmatpush3.bf16.msra.mxu0 %v4329_v34 }
0x1c4c   :  { %4334 = vmatprep.subr.bf16.mxu0 %v4333_v58 }
0x1c4f   :  { %4336 = vmatpush3.bf16.msra.mxu0 %v4333_v58 }
0x1d15   :  { %v4226_v62 = vpop.f32.mrb[32].mxu0 }
0x1d16   :  { %v3480_v6 = vadd.f32 %v4226_v62, %v3850_v5  ;;  %v3474_v7 = vpop.f32.mrb[33].mxu0 }
0x1d17   :  { %v3475_v8 = vadd.f32 %v3850_v5, %v3474_v7  ;;  %v3870_v5 = vld [vmem:[%s5296_s9 + $0x1] ss:$0 sm:$0xff]  ;;  %s4513_s9 = scalar_lea.vmem %s3765_s8, 256 }
0x1d18   :  { %v5197_v9 = vadd.f32 %v3480_v6, %v4975_v47  ;;  %p4514_p10 = scmp.ne.s32.totalorder %s3765_s8, %s4513_s9  ;;  %p4519_p12 = scmp.lt.s32.totalorder %s4513_s9, %s4513_s9 }
0x1d19   :  { %v5200_v49 = vadd.f32 %v3475_v8, %v4978_v48 }
0x1d1a   :  { %v3488_v44 = vsel %vm89_vm0, %v5197_v9, 0.0  ;;  %p4520_p13 = por %p4519_p12, %p4518_p11 }
0x1d1b   :  { %3489 = vadd.xlane.f32.xlu1 %v3488_v44  ;;  %v3485_v53 = vsel %vm89_vm0, %v5200_v49, 0.0 }
0x1d1c   :  { %3486 = vadd.xlane.f32.xlu0 %v3485_v53  ;;  %p4521_p0 = pnand %p4520_p13, %p4514_p10 }
0x1da8   :  { %v3490_v46 = vpop.xlane.xlu1 %3489 }
0x1da9   :  { %v3492_v10 = vmul.f32 0.03125, %v3490_v46  ;;  %v3487_v11 = vpop.xlane.xlu0 %3486 }
0x1daa   :  { %v3491_v12 = vmul.f32 0.03125, %v3487_v11 }
0x1dab   :  { %v3494_v13 = vsub.f32 %v5197_v9, %v3492_v10 }
0x1dac   :  { %v3493_v47 = vsub.f32 %v5200_v49, %v3491_v12 }
0x1dad   :  { %v3496_v15 = vmul.f32 %v3494_v13, %v3494_v13 }
0x1dae   :  { %v3495_v14 = vmul.f32 %v3493_v47, %v3493_v47 }
0x1daf   :  { %v3500_v16 = vsel %vm89_vm0, %v3496_v15, 0.0 }
0x1db0   :  { %v3497_v48 = vsel %vm89_vm0, %v3495_v14, 0.0 }
0x1db1   :  { %3498 = vadd.xlane.f32.xlu0 %v3497_v48 }
0x1db5   :  { %3501 = vadd.xlane.f32.xlu0 %v3500_v16 }
0x1e3e   :  { %v3499_v35 = vpop.xlane.xlu0 %3498 }
0x1e3f   :  { %v3503_v19 = vmul.f32 0.03125, %v3499_v35 }
0x1e41   :  { %v3505_v36 = vadd.f32 1e-06, %v3503_v19 }
0x1e42   :  { %v3502_v37 = vpop.xlane.xlu0 %3501 }
0x1e43   :  { %4435 = vrsqrt.f32 %v3505_v36  ;;  %v3504_v38 = vmul.f32 0.03125, %v3502_v37 }
0x1e45   :  { %v3506_v39 = vadd.f32 1e-06, %v3504_v38 }
0x1e47   :  { %4437 = vrsqrt.f32 %v3506_v39 }
0x1e4d   :  { %v4436_v45 = vpop.eup %4435 }
0x1e4e   :  { %v3509_v50 = vmul.f32 %v4436_v45, %v3493_v47 }
0x1e50   :  { %v3515_v52 = vmul.f32 %v3514_v43, %v3509_v50 }
0x1e51   :  { %v4438_v0 = vpop.eup %4437 }
0x1e52   :  { %v3510_v54 = vmul.f32 %v4438_v0, %v3494_v13  ;;  %v3521_v55 = vadd.f32 %v3520_v1, %v3515_v52 }
0x1e54   :  { %v3516_v40 = vmul.f32 %v3514_v43, %v3510_v54  ;;  %4235 = vmatprep.mubr.msk.f32.mxu1 %vm89_vm0, %v3521_v55 }
0x1e56   :  { %v3522_v56 = vadd.f32 %v3520_v1, %v3516_v40 }
0x1e58   :  { %4236 = vmatmul.mubr.msk.f32.vlgmr.msra.gmra.mrb[42].mxu1 %vm89_vm0, %v3522_v56 }
0x1f2b   :  { %v4237_v60 = vpop.f32.mrb[42].mxu1 }
0x1f2c   :  { %v3614_v2 = vadd.f32 %v4237_v60, %v3858_v59  ;;  %v3608_v61 = vpop.f32.mrb[43].mxu1 }
0x1f2d   :  { %v3609_v3 = vadd.f32 %v3858_v59, %v3608_v61 }
0x1f2e   :  { %v3618_v4 = vmax.f32 %v3614_v2, 0.0 }
0x1f2f   :  { %v3617_v63 = vmax.f32 %v3609_v3, 0.0 }
0x1f31   :  { %4254 = vmatprep.mubr.msk.f32.mxu0 %vm1825_vm5, %v3617_v63 }
0x1f32   :  { %4255 = vmatmul.mubr.msk.f32.vlgmr.msra.gmra.mrb[34].mxu0 %vm1825_vm5, %v3618_v4 }
0x2005   :  { %v4256_v62 = vpop.f32.mrb[34].mxu0 }
0x2006   :  { %v3714_v6 = vadd.f32 %v4256_v62, %v3870_v5  ;;  %v3708_v7 = vpop.f32.mrb[35].mxu0 }
0x2007   :  { %v3709_v8 = vadd.f32 %v3870_v5, %v3708_v7 }
0x2008   :  { %v3718_v44 = vadd.f32 %v3714_v6, %v5197_v9 }
0x2009   :  { %v3717_v53 = vadd.f32 %v3709_v8, %v5200_v49 }
0x200a   :  { %v3722_v46 = vsel %vm89_vm0, %v3718_v44, 0.0 }
0x200b   :  { %3723 = vadd.xlane.f32.xlu1 %v3722_v46  ;;  %v3719_v10 = vsel %vm89_vm0, %v3717_v53, 0.0 }
0x200c   :  { %3720 = vadd.xlane.f32.xlu0 %v3719_v10 }
0x2098   :  { %v3724_v11 = vpop.xlane.xlu1 %3723 }
0x2099   :  { %v3726_v12 = vmul.f32 0.03125, %v3724_v11  ;;  %v3721_v13 = vpop.xlane.xlu0 %3720 }
0x209a   :  { %v3725_v47 = vmul.f32 0.03125, %v3721_v13 }
0x209b   :  { %v3728_v14 = vsub.f32 %v3718_v44, %v3726_v12 }
0x209c   :  { %v3727_v48 = vsub.f32 %v3717_v53, %v3725_v47 }
0x209d   :  { %v3730_v15 = vmul.f32 %v3728_v14, %v3728_v14 }
0x209e   :  { %v3729_v16 = vmul.f32 %v3727_v48, %v3727_v48 }
0x209f   :  { %v3734_v17 = vsel %vm89_vm0, %v3730_v15, 0.0 }
0x20a0   :  { %3735 = vadd.xlane.f32.xlu1 %v3734_v17  ;;  %v3731_v9 = vsel %vm89_vm0, %v3729_v16, 0.0 }
0x20a1   :  { %3732 = vadd.xlane.f32.xlu0 %v3731_v9 }
0x212d   :  { %v3736_v49 = vpop.xlane.xlu1 %3735 }
0x212e   :  { %v3738_v18 = vmul.f32 0.03125, %v3736_v49  ;;  %v3733_v20 = vpop.xlane.xlu0 %3732 }
0x212f   :  { %v3737_v22 = vmul.f32 0.03125, %v3733_v20 }
0x2130   :  { %v3740_v41 = vadd.f32 1e-06, %v3738_v18 }
0x2131   :  { %v3739_v30 = vadd.f32 1e-06, %v3737_v22 }
0x2132   :  { %4439 = vrsqrt.f32 %v3740_v41 }
0x2133   :  { %4441 = vrsqrt.f32 %v3739_v30 }
0x213c   :  { %v4440_v27 = vpop.eup %4439 }
0x213d   :  { %v4442_v28 = vpop.eup %4441  ;;  %v3744_v31 = vmul.f32 %v4440_v27, %v3728_v14 }
0x213e   :  { %v3743_v29 = vmul.f32 %v4442_v28, %v3727_v48 }
0x213f   :  { %v3750_v33 = vmul.f32 %v3748_v25, %v3744_v31 }
0x2140   :  { %v3749_v34 = vmul.f32 %v3748_v25, %v3743_v29 }
0x2141   :  { %v3756_v35 = vadd.f32 %v3754_v32, %v3750_v33 }
0x2142   :  { %v3755_v19 = vadd.f32 %v3754_v32, %v3749_v34 }
0x2143   :  { %3758 = vst.msk [vmem:[#allocation8 + $0x8] sm:$0xff] %vm89_vm0, %v3756_v35 }
0x2144   :  { %3757 = vst.msk [vmem:[#allocation8] sm:$0xff] %vm89_vm0, %v3755_v19 }
0x2145   :  { %4524 = shalt.err (!%p4521_p0)
}
0x2146   :  { %s4525_s25 = scalar_lea.hbm %s5299_s12, 256 }
0x2147   :  { %p4526_p1 = scmp.ne.s32.totalorder %s5299_s12, %s4525_s25  ;;  %p4529_p2 = scmp.lt.u32.totalorder %s4525_s25, %s5299_s12 }
0x2149   :  { %p4531_p3 = pnand %p4529_p2, %p4526_p1 }
0x214b   :  { %4534 = shalt.err (!%p4531_p3)
}
0x214c   :  { %s5310_s14 = smov 128  }
0x214d   :  { %3770 = dma.vmem_to_hbm [thread:$0]  %s3765_s8, 256, %s5299_s12, [#allocation4], %s5310_s14, %s5310_s14, %s5307_s1  }
0x214e   :  { %4539 = dma.done.wait [#allocation4], 256  }
0x214f   :  { %4540 = vsyncadd [#allocation4], 4294967040 }
0x2150   :  { %3774 = vsyncpa [#allocation3], 1 }
0x2151   :  { %3775 = vsyncpa [#allocation6], 1 }
0x2152   :  { %3776 = vsyncpa [#allocation4], 1 }

</bundles_post_ra>
